<compile_context>
chip_gen: v7x
topology: tpu7x:2x2x1
jax: 0.10.0
libtpu: 0.0.40
codegen_flags: <defaults>
</compile_context>

<pallas_src>
import jax
import jax.numpy as jnp
from jax import lax
from jax.experimental import pallas as pl
from jax.experimental.pallas import tpu as pltpu

CHUNK = 128  # inner register-block width (lanes of one vreg)


def mlp_kernel(x_ref,
               w1_ref, b1_ref,
               w2_ref, b2_ref,
               w3_ref, b3_ref,
               w4_ref, b4_ref,
               w5_ref, b5_ref,
               o_ref):
    """Fused 5-layer MLP: (Linear+ReLU) x4 -> Linear -> Sigmoid.

    x_ref   : (bt, input_dim) activations for this batch tile (f32 or bf16).
    w{1..4} : PyTorch-layout weights (out, in), bf16 MXU operands.
    b{1..4} : biases as (out, 1) bf16 columns.
    w5_ref  : (8, 1) f32 column (VPU final layer); b5_ref: (1, 1) f32.
    o_ref   : (1, bt) f32 lane-dense output row for this tile.
    """
    bt = x_ref.shape[0]
    n_chunks = bt // CHUNK  # static (block shape is compile-time)

    # --- Hoisted, grid/chunk-invariant setup (loads + bias broadcasts). ---
    w1 = w1_ref[...]                                       # (64, in)  bf16
    w2 = w2_ref[...]                                       # (32, 64)  bf16
    w3 = w3_ref[...]                                       # (16, 32)  bf16
    w4 = w4_ref[...]                                       # (8, 16)   bf16
    b1 = jnp.broadcast_to(b1_ref[...], (w1.shape[0], CHUNK))
    b2 = jnp.broadcast_to(b2_ref[...], (w2.shape[0], CHUNK))
    b3 = jnp.broadcast_to(b3_ref[...], (w3.shape[0], CHUNK))
    b4 = jnp.broadcast_to(b4_ref[...], (w4.shape[0], CHUNK))
    w5 = jnp.broadcast_to(w5_ref[...], (w4.shape[0], CHUNK))  # (8, CHUNK) f32
    b5 = jnp.broadcast_to(b5_ref[...], (1, CHUNK))             # (1, CHUNK) f32

    def chunk_body(c, carry):
        off = pl.multiple_of(c * CHUNK, CHUNK)
        # x chunk: (CHUNK, in).  In-kernel bf16 cast (no-op if x is bf16).
        xc = x_ref[pl.ds(off, CHUNK), :].astype(jnp.bfloat16)

        # Layer 1 (transposed domain): h = relu(W1 @ xc^T + b1) -> (64, CHUNK).
        # Contract the last dims of both operands so xc is never transposed.
        h = lax.dot_general(w1, xc,
                            dimension_numbers=(((1,), (1,)), ((), ())),
                            preferred_element_type=jnp.float32)
        h = jnp.maximum(h.astype(jnp.bfloat16) + b1, 0)

        # Layers 2-4: (32,CHUNK) -> (16,CHUNK) -> (8,CHUNK); bf16 epilogues.
        for w, b in ((w2, b2), (w3, b3), (w4, b4)):
            h = jnp.dot(w, h, preferred_element_type=jnp.float32)
            h = jnp.maximum(h.astype(jnp.bfloat16) + b, 0)

        # Layer 5 (8 -> 1): VPU broadcast-mul + sublane reduce, f32.
        z = jnp.sum(h.astype(jnp.float32) * w5, axis=0, keepdims=True) + b5

        # Exact sigmoid (EUP exp + exact divide); lane-dense aligned store.
        sig = 1.0 / (1.0 + jnp.exp(-z))
        o_ref[:, pl.ds(off, CHUNK)] = sig.astype(o_ref.dtype)
        return carry

    lax.fori_loop(0, n_chunks, chunk_body, 0, unroll=(n_chunks <= 8))


def _default_batch_tile(batch):
    """Pick a DMA tile: large (amortize ~0.35us/step), multiple of CHUNK,
    >= 2 grid steps when possible (pipelining + v7x 2-TC sharding)."""
    b_pad = pl.cdiv(batch, CHUNK) * CHUNK
    for cand in (8192, 4096, 2048, 1024, 512, 256):
        if b_pad % cand == 0 and b_pad // cand >= 2:
            return cand
    # Small / awkward batches: one padded tile (capped so VMEM stays tiny).
    return min(b_pad, 4096)


def mlp_forward(x, kernel_params, *, batch_tile=None):
    """x: (B, input_dim) f32 (or bf16).  kernel_params from pack_kernel_params."""
    B, input_dim = x.shape
    if batch_tile is None:
        batch_tile = _default_batch_tile(B)
    assert batch_tile % CHUNK == 0, batch_tile

    # Pad the batch up to a whole number of tiles (never fall back to a single
    # unpipelined full-batch tile).  Padding rows compute garbage and are
    # sliced off below.
    num_tiles = pl.cdiv(B, batch_tile)
    B_pad = num_tiles * batch_tile
    if B_pad != B:
        x = jnp.pad(x, ((0, B_pad - B), (0, 0)))

    in_specs = [pl.BlockSpec((batch_tile, input_dim), lambda i: (i, 0))]
    for p in kernel_params:
        # Weights/biases are tiny 2D arrays, grid-invariant (no re-DMA).
        in_specs.append(pl.BlockSpec(p.shape, lambda i: (0, 0)))

    # Lane-dense output: one (1, batch_tile) row per grid step; leading grid
    # dim squeezed out of the kernel view.
    out_specs = pl.BlockSpec((None, 1, batch_tile), lambda i: (i, 0, 0))

    out = pl.pallas_call(
        mlp_kernel,
        out_shape=jax.ShapeDtypeStruct((num_tiles, 1, batch_tile), jnp.float32),
        grid_spec=pltpu.PrefetchScalarGridSpec(
            num_scalar_prefetch=0,
            grid=(num_tiles,),
            in_specs=in_specs,
            out_specs=out_specs,
        ),
        compiler_params=pltpu.CompilerParams(
            dimension_semantics=("parallel",),
            # 32 MiB is safe on every generation incl. v7x's 64 MiB VMEM;
            # an 8192-row f32 x tile is ~8 MiB double-buffered (lane-padded).
            vmem_limit_bytes=32 * 1024 * 1024,
        ),
    )(x, *kernel_params)

    out = out.reshape(B_pad, 1)
    return out[:B] if B_pad != B else out


def init_params(key, input_dim):
    """PyTorch nn.Linear-style init: W (out, in), b (out,), uniform +-1/sqrt(fan_in)."""
    dims = [input_dim, 64, 32, 16, 8, 1]
    params = []
    for i in range(len(dims) - 1):
        fan_in, fan_out = dims[i], dims[i + 1]
        key, kw, kb = jax.random.split(key, 3)
        bound = 1.0 / jnp.sqrt(jnp.float32(fan_in))
        w = jax.random.uniform(kw, (fan_out, fan_in), jnp.float32, -bound, bound)
        b = jax.random.uniform(kb, (fan_out,), jnp.float32, -bound, bound)
        params.append((w, b))
    return params


def pack_kernel_params(params):
    """PyTorch-layout (W, b) pairs -> flat kernel operands.

    Layers 1-4: W stays (out, in) cast to bf16 (MXU operand); b -> (out, 1) bf16.
    Layer 5:    w -> (8, 1) f32 column (VPU path); b -> (1, 1) f32.
    """
    flat = []
    n = len(params)
    for li, (w, b) in enumerate(params):
        if li < n - 1:
            flat.append(w.astype(jnp.bfloat16))
            flat.append(b[:, None].astype(jnp.bfloat16))
        else:
            flat.append(w.reshape(-1, 1).astype(jnp.float32))
            flat.append(b.reshape(1, 1).astype(jnp.float32))
    return flat


def mlp_reference(x, params):
    h = x
    for i, (w, b) in enumerate(params):
        h = h @ w.T + b
        if i < len(params) - 1:
            h = jnp.maximum(h, 0.0)
    return jax.nn.sigmoid(h)


if __name__ == "__main__":
    key = jax.random.PRNGKey(0)
    input_dim = 32   # synthetic "adult income" feature width
    k_x, k_p = jax.random.split(key)

    params = init_params(k_p, input_dim)
    kparams = pack_kernel_params(params)

    # Multi-tile run: default tiling picks 2 x 1024-row tiles, 8 chunks each.
    B = 2048
    x = jax.random.normal(k_x, (B, input_dim), jnp.float32)
    out = jax.block_until_ready(mlp_forward(x, kparams))
    ref = mlp_reference(x, params)
    assert out.shape == (B, 1)
    max_err = float(jnp.max(jnp.abs(out - ref)))
    # bf16 MXU operands / epilogues (f32 accumulation) -> loosened tolerance.
    assert jnp.allclose(out, ref, atol=2e-2), max_err

    # Odd batch: exercises the pad-to-tile path (300 -> one 384-row tile).
    xo = x[:300]
    out_o = jax.block_until_ready(mlp_forward(xo, kparams))
    assert out_o.shape == (300, 1)
    assert jnp.allclose(out_o, ref[:300], atol=2e-2)

    print("KERNEL_OK")
</pallas_src>

<mosaic_0001>
module attributes {stable_mosaic.version = 11 : i64} {
  func.func @mlp_kernel(%arg0: i32, %arg1: memref<1024x32xf32, #tpu.memory_space<vmem>>, %arg2: memref<64x32xbf16, #tpu.memory_space<vmem>>, %arg3: memref<64x1xbf16, #tpu.memory_space<vmem>>, %arg4: memref<32x64xbf16, #tpu.memory_space<vmem>>, %arg5: memref<32x1xbf16, #tpu.memory_space<vmem>>, %arg6: memref<16x32xbf16, #tpu.memory_space<vmem>>, %arg7: memref<16x1xbf16, #tpu.memory_space<vmem>>, %arg8: memref<8x16xbf16, #tpu.memory_space<vmem>>, %arg9: memref<8x1xbf16, #tpu.memory_space<vmem>>, %arg10: memref<8x1xf32, #tpu.memory_space<vmem>>, %arg11: memref<1x1xf32, #tpu.memory_space<vmem>>, %arg12: memref<1x1x1024xf32, #tpu.memory_space<vmem>>) attributes {dimension_semantics = [#tpu.dimension_semantics<parallel>], iteration_bounds = array<i64: 2>, scalar_prefetch = 0 : i64, scratch_operands = 0 : i64, tpu.core_type = #tpu.core_type<tc>, window_params = [{transform_indices = @transform_0, window_bounds = array<i64: 1024, 32>}, {pipeline_mode = #tpu.pipeline_mode<synchronous>, transform_indices = @transform_1, window_bounds = array<i64: 64, 32>}, {pipeline_mode = #tpu.pipeline_mode<synchronous>, transform_indices = @transform_2, window_bounds = array<i64: 64, 1>}, {pipeline_mode = #tpu.pipeline_mode<synchronous>, transform_indices = @transform_3, window_bounds = array<i64: 32, 64>}, {pipeline_mode = #tpu.pipeline_mode<synchronous>, transform_indices = @transform_4, window_bounds = array<i64: 32, 1>}, {pipeline_mode = #tpu.pipeline_mode<synchronous>, transform_indices = @transform_5, window_bounds = array<i64: 16, 32>}, {pipeline_mode = #tpu.pipeline_mode<synchronous>, transform_indices = @transform_6, window_bounds = array<i64: 16, 1>}, {pipeline_mode = #tpu.pipeline_mode<synchronous>, transform_indices = @transform_7, window_bounds = array<i64: 8, 16>}, {pipeline_mode = #tpu.pipeline_mode<synchronous>, transform_indices = @transform_8, window_bounds = array<i64: 8, 1>}, {pipeline_mode = #tpu.pipeline_mode<synchronous>, transform_indices = @transform_9, window_bounds = array<i64: 8, 1>}, {pipeline_mode = #tpu.pipeline_mode<synchronous>, transform_indices = @transform_10, window_bounds = array<i64: 1, 1>}, {transform_indices = @transform_11, window_bounds = array<i64: 1, 1, 1024>}]} {
    %c0 = arith.constant 0 : index
    %c0_0 = arith.constant 0 : index
    %0 = vector.load %arg2[%c0, %c0_0] : memref<64x32xbf16, #tpu.memory_space<vmem>>, vector<64x32xbf16>
    %c0_1 = arith.constant 0 : index
    %c0_2 = arith.constant 0 : index
    %1 = vector.load %arg4[%c0_1, %c0_2] : memref<32x64xbf16, #tpu.memory_space<vmem>>, vector<32x64xbf16>
    %c0_3 = arith.constant 0 : index
    %c0_4 = arith.constant 0 : index
    %2 = vector.load %arg6[%c0_3, %c0_4] : memref<16x32xbf16, #tpu.memory_space<vmem>>, vector<16x32xbf16>
    %c0_5 = arith.constant 0 : index
    %c0_6 = arith.constant 0 : index
    %3 = vector.load %arg8[%c0_5, %c0_6] : memref<8x16xbf16, #tpu.memory_space<vmem>>, vector<8x16xbf16>
    %c0_7 = arith.constant 0 : index
    %c0_8 = arith.constant 0 : index
    %4 = vector.load %arg3[%c0_7, %c0_8] : memref<64x1xbf16, #tpu.memory_space<vmem>>, vector<64x1xbf16>
    %5 = vector.shape_cast %4 : vector<64x1xbf16> to vector<64x1xbf16>
    %6 = vector.broadcast %5 : vector<64x1xbf16> to vector<64x128xbf16>
    %c0_9 = arith.constant 0 : index
    %c0_10 = arith.constant 0 : index
    %7 = vector.load %arg5[%c0_9, %c0_10] : memref<32x1xbf16, #tpu.memory_space<vmem>>, vector<32x1xbf16>
    %8 = vector.shape_cast %7 : vector<32x1xbf16> to vector<32x1xbf16>
    %9 = vector.broadcast %8 : vector<32x1xbf16> to vector<32x128xbf16>
    %c0_11 = arith.constant 0 : index
    %c0_12 = arith.constant 0 : index
    %10 = vector.load %arg7[%c0_11, %c0_12] : memref<16x1xbf16, #tpu.memory_space<vmem>>, vector<16x1xbf16>
    %11 = vector.shape_cast %10 : vector<16x1xbf16> to vector<16x1xbf16>
    %12 = vector.broadcast %11 : vector<16x1xbf16> to vector<16x128xbf16>
    %c0_13 = arith.constant 0 : index
    %c0_14 = arith.constant 0 : index
    %13 = vector.load %arg9[%c0_13, %c0_14] : memref<8x1xbf16, #tpu.memory_space<vmem>>, vector<8x1xbf16>
    %14 = vector.shape_cast %13 : vector<8x1xbf16> to vector<8x1xbf16>
    %15 = vector.broadcast %14 : vector<8x1xbf16> to vector<8x128xbf16>
    %c0_15 = arith.constant 0 : index
    %c0_16 = arith.constant 0 : index
    %16 = vector.load %arg10[%c0_15, %c0_16] : memref<8x1xf32, #tpu.memory_space<vmem>>, vector<8x1xf32>
    %17 = vector.shape_cast %16 : vector<8x1xf32> to vector<8x1xf32>
    %18 = vector.broadcast %17 : vector<8x1xf32> to vector<8x128xf32>
    %c0_17 = arith.constant 0 : index
    %c0_18 = arith.constant 0 : index
    %19 = vector.load %arg11[%c0_17, %c0_18] : memref<1x1xf32, #tpu.memory_space<vmem>>, vector<1x1xf32>
    %20 = vector.shape_cast %19 : vector<1x1xf32> to vector<1x1xf32>
    %21 = vector.broadcast %20 : vector<1x1xf32> to vector<1x128xf32>
    %c0_i32 = arith.constant 0 : i32
    %c128_i32 = arith.constant 128 : i32
    %22 = arith.muli %c0_i32, %c128_i32 : i32
    %23 = tpu.assume_multiple %22, 128 : i32
    %24 = arith.index_cast %23 : i32 to index
    %c0_19 = arith.constant 0 : index
    %25 = vector.load %arg1[%24, %c0_19] : memref<1024x32xf32, #tpu.memory_space<vmem>>, vector<128x32xf32>
    %26 = arith.truncf %25 : vector<128x32xf32> to vector<128x32xbf16>
    %cst = arith.constant dense<0.000000e+00> : vector<64x128xf32>
    %27 = tpu.matmul %0, %26, %cst {dimension_numbers = #tpu.dot_dimension_numbers<[1], [1], [0], [0], [0, 0, 1, 0], [], []>} : vector<64x32xbf16>, vector<128x32xbf16>, vector<64x128xf32> -> vector<64x128xf32>
    %28 = arith.truncf %27 : vector<64x128xf32> to vector<64x128xbf16>
    %29 = arith.addf %28, %6 : vector<64x128xbf16>
    %cst_20 = arith.constant 0.000000e+00 : bf16
    %30 = vector.broadcast %cst_20 : bf16 to vector<64x128xbf16>
    %31 = arith.maximumf %29, %30 : vector<64x128xbf16>
    %cst_21 = arith.constant dense<0.000000e+00> : vector<32x128xf32>
    %32 = tpu.matmul %1, %31, %cst_21 {dimension_numbers = #tpu.dot_dimension_numbers<[1], [0], [0], [1], [0, 0, 1, 1], [], []>} : vector<32x64xbf16>, vector<64x128xbf16>, vector<32x128xf32> -> vector<32x128xf32>
    %33 = arith.truncf %32 : vector<32x128xf32> to vector<32x128xbf16>
    %34 = arith.addf %33, %9 : vector<32x128xbf16>
    %cst_22 = arith.constant 0.000000e+00 : bf16
    %35 = vector.broadcast %cst_22 : bf16 to vector<32x128xbf16>
    %36 = arith.maximumf %34, %35 : vector<32x128xbf16>
    %cst_23 = arith.constant dense<0.000000e+00> : vector<16x128xf32>
    %37 = tpu.matmul %2, %36, %cst_23 {dimension_numbers = #tpu.dot_dimension_numbers<[1], [0], [0], [1], [0, 0, 1, 1], [], []>} : vector<16x32xbf16>, vector<32x128xbf16>, vector<16x128xf32> -> vector<16x128xf32>
    %38 = arith.truncf %37 : vector<16x128xf32> to vector<16x128xbf16>
    %39 = arith.addf %38, %12 : vector<16x128xbf16>
    %cst_24 = arith.constant 0.000000e+00 : bf16
    %40 = vector.broadcast %cst_24 : bf16 to vector<16x128xbf16>
    %41 = arith.maximumf %39, %40 : vector<16x128xbf16>
    %cst_25 = arith.constant dense<0.000000e+00> : vector<8x128xf32>
    %42 = tpu.matmul %3, %41, %cst_25 {dimension_numbers = #tpu.dot_dimension_numbers<[1], [0], [0], [1], [0, 0, 1, 1], [], []>} : vector<8x16xbf16>, vector<16x128xbf16>, vector<8x128xf32> -> vector<8x128xf32>
    %43 = arith.truncf %42 : vector<8x128xf32> to vector<8x128xbf16>
    %44 = arith.addf %43, %15 : vector<8x128xbf16>
    %cst_26 = arith.constant 0.000000e+00 : bf16
    %45 = vector.broadcast %cst_26 : bf16 to vector<8x128xbf16>
    %46 = arith.maximumf %44, %45 : vector<8x128xbf16>
    %47 = arith.extf %46 : vector<8x128xbf16> to vector<8x128xf32>
    %48 = arith.mulf %47, %18 : vector<8x128xf32>
    %cst_27 = arith.constant dense<0.000000e+00> : vector<128xf32>
    %49 = vector.multi_reduction <add>, %48, %cst_27 [0] : vector<8x128xf32> to vector<128xf32>
    %50 = vector.shape_cast %49 : vector<128xf32> to vector<1x128xf32>
    %51 = arith.addf %50, %21 : vector<1x128xf32>
    %cst_28 = arith.constant 0.000000e+00 : f32
    %52 = vector.broadcast %cst_28 : f32 to vector<1x128xf32>
    %53 = arith.subf %52, %51 : vector<1x128xf32>
    %54 = math.exp %53 : vector<1x128xf32>
    %cst_29 = arith.constant 1.000000e+00 : f32
    %55 = vector.broadcast %cst_29 : f32 to vector<1x128xf32>
    %56 = arith.addf %55, %54 : vector<1x128xf32>
    %cst_30 = arith.constant 1.000000e+00 : f32
    %57 = vector.broadcast %cst_30 : f32 to vector<1x128xf32>
    %58 = arith.divf %57, %56 : vector<1x128xf32>
    %c0_31 = arith.constant 0 : index
    %c0_32 = arith.constant 0 : index
    %59 = arith.index_cast %23 : i32 to index
    %60 = vector.load %arg12[%c0_31, %c0_32, %59] : memref<1x1x1024xf32, #tpu.memory_space<vmem>>, vector<1x1x128xf32>
    %61 = vector.shape_cast %60 : vector<1x1x128xf32> to vector<1x128xf32>
    %62 = vector.shape_cast %58 : vector<1x128xf32> to vector<1x1x128xf32>
    tpu.vector_store %arg12[%c0_31, %c0_32, %59], %62 {strides = array<i32>} : memref<1x1x1024xf32, #tpu.memory_space<vmem>>, vector<1x1x128xf32>,
    %c1_i32 = arith.constant 1 : i32
    %c128_i32_33 = arith.constant 128 : i32
    %63 = arith.muli %c1_i32, %c128_i32_33 : i32
    %64 = tpu.assume_multiple %63, 128 : i32
    %65 = arith.index_cast %64 : i32 to index
    %c0_34 = arith.constant 0 : index
    %66 = vector.load %arg1[%65, %c0_34] : memref<1024x32xf32, #tpu.memory_space<vmem>>, vector<128x32xf32>
    %67 = arith.truncf %66 : vector<128x32xf32> to vector<128x32xbf16>
    %cst_35 = arith.constant dense<0.000000e+00> : vector<64x128xf32>
    %68 = tpu.matmul %0, %67, %cst_35 {dimension_numbers = #tpu.dot_dimension_numbers<[1], [1], [0], [0], [0, 0, 1, 0], [], []>} : vector<64x32xbf16>, vector<128x32xbf16>, vector<64x128xf32> -> vector<64x128xf32>
    %69 = arith.truncf %68 : vector<64x128xf32> to vector<64x128xbf16>
    %70 = arith.addf %69, %6 : vector<64x128xbf16>
    %cst_36 = arith.constant 0.000000e+00 : bf16
    %71 = vector.broadcast %cst_36 : bf16 to vector<64x128xbf16>
    %72 = arith.maximumf %70, %71 : vector<64x128xbf16>
    %cst_37 = arith.constant dense<0.000000e+00> : vector<32x128xf32>
    %73 = tpu.matmul %1, %72, %cst_37 {dimension_numbers = #tpu.dot_dimension_numbers<[1], [0], [0], [1], [0, 0, 1, 1], [], []>} : vector<32x64xbf16>, vector<64x128xbf16>, vector<32x128xf32> -> vector<32x128xf32>
    %74 = arith.truncf %73 : vector<32x128xf32> to vector<32x128xbf16>
    %75 = arith.addf %74, %9 : vector<32x128xbf16>
    %cst_38 = arith.constant 0.000000e+00 : bf16
    %76 = vector.broadcast %cst_38 : bf16 to vector<32x128xbf16>
    %77 = arith.maximumf %75, %76 : vector<32x128xbf16>
    %cst_39 = arith.constant dense<0.000000e+00> : vector<16x128xf32>
    %78 = tpu.matmul %2, %77, %cst_39 {dimension_numbers = #tpu.dot_dimension_numbers<[1], [0], [0], [1], [0, 0, 1, 1], [], []>} : vector<16x32xbf16>, vector<32x128xbf16>, vector<16x128xf32> -> vector<16x128xf32>
    %79 = arith.truncf %78 : vector<16x128xf32> to vector<16x128xbf16>
    %80 = arith.addf %79, %12 : vector<16x128xbf16>
    %cst_40 = arith.constant 0.000000e+00 : bf16
    %81 = vector.broadcast %cst_40 : bf16 to vector<16x128xbf16>
    %82 = arith.maximumf %80, %81 : vector<16x128xbf16>
    %cst_41 = arith.constant dense<0.000000e+00> : vector<8x128xf32>
    %83 = tpu.matmul %3, %82, %cst_41 {dimension_numbers = #tpu.dot_dimension_numbers<[1], [0], [0], [1], [0, 0, 1, 1], [], []>} : vector<8x16xbf16>, vector<16x128xbf16>, vector<8x128xf32> -> vector<8x128xf32>
    %84 = arith.truncf %83 : vector<8x128xf32> to vector<8x128xbf16>
    %85 = arith.addf %84, %15 : vector<8x128xbf16>
    %cst_42 = arith.constant 0.000000e+00 : bf16
    %86 = vector.broadcast %cst_42 : bf16 to vector<8x128xbf16>
    %87 = arith.maximumf %85, %86 : vector<8x128xbf16>
    %88 = arith.extf %87 : vector<8x128xbf16> to vector<8x128xf32>
    %89 = arith.mulf %88, %18 : vector<8x128xf32>
    %cst_43 = arith.constant dense<0.000000e+00> : vector<128xf32>
    %90 = vector.multi_reduction <add>, %89, %cst_43 [0] : vector<8x128xf32> to vector<128xf32>
    %91 = vector.shape_cast %90 : vector<128xf32> to vector<1x128xf32>
    %92 = arith.addf %91, %21 : vector<1x128xf32>
    %cst_44 = arith.constant 0.000000e+00 : f32
    %93 = vector.broadcast %cst_44 : f32 to vector<1x128xf32>
    %94 = arith.subf %93, %92 : vector<1x128xf32>
    %95 = math.exp %94 : vector<1x128xf32>
    %cst_45 = arith.constant 1.000000e+00 : f32
    %96 = vector.broadcast %cst_45 : f32 to vector<1x128xf32>
    %97 = arith.addf %96, %95 : vector<1x128xf32>
    %cst_46 = arith.constant 1.000000e+00 : f32
    %98 = vector.broadcast %cst_46 : f32 to vector<1x128xf32>
    %99 = arith.divf %98, %97 : vector<1x128xf32>
    %c0_47 = arith.constant 0 : index
    %c0_48 = arith.constant 0 : index
    %100 = arith.index_cast %64 : i32 to index
    %101 = vector.load %arg12[%c0_47, %c0_48, %100] : memref<1x1x1024xf32, #tpu.memory_space<vmem>>, vector<1x1x128xf32>
    %102 = vector.shape_cast %101 : vector<1x1x128xf32> to vector<1x128xf32>
    %103 = vector.shape_cast %99 : vector<1x128xf32> to vector<1x1x128xf32>
    tpu.vector_store %arg12[%c0_47, %c0_48, %100], %103 {strides = array<i32>} : memref<1x1x1024xf32, #tpu.memory_space<vmem>>, vector<1x1x128xf32>,
    %c2_i32 = arith.constant 2 : i32
    %c128_i32_49 = arith.constant 128 : i32
    %104 = arith.muli %c2_i32, %c128_i32_49 : i32
    %105 = tpu.assume_multiple %104, 128 : i32
    %106 = arith.index_cast %105 : i32 to index
    %c0_50 = arith.constant 0 : index
    %107 = vector.load %arg1[%106, %c0_50] : memref<1024x32xf32, #tpu.memory_space<vmem>>, vector<128x32xf32>
    %108 = arith.truncf %107 : vector<128x32xf32> to vector<128x32xbf16>
    %cst_51 = arith.constant dense<0.000000e+00> : vector<64x128xf32>
    %109 = tpu.matmul %0, %108, %cst_51 {dimension_numbers = #tpu.dot_dimension_numbers<[1], [1], [0], [0], [0, 0, 1, 0], [], []>} : vector<64x32xbf16>, vector<128x32xbf16>, vector<64x128xf32> -> vector<64x128xf32>
    %110 = arith.truncf %109 : vector<64x128xf32> to vector<64x128xbf16>
    %111 = arith.addf %110, %6 : vector<64x128xbf16>
    %cst_52 = arith.constant 0.000000e+00 : bf16
    %112 = vector.broadcast %cst_52 : bf16 to vector<64x128xbf16>
    %113 = arith.maximumf %111, %112 : vector<64x128xbf16>
    %cst_53 = arith.constant dense<0.000000e+00> : vector<32x128xf32>
    %114 = tpu.matmul %1, %113, %cst_53 {dimension_numbers = #tpu.dot_dimension_numbers<[1], [0], [0], [1], [0, 0, 1, 1], [], []>} : vector<32x64xbf16>, vector<64x128xbf16>, vector<32x128xf32> -> vector<32x128xf32>
    %115 = arith.truncf %114 : vector<32x128xf32> to vector<32x128xbf16>
    %116 = arith.addf %115, %9 : vector<32x128xbf16>
    %cst_54 = arith.constant 0.000000e+00 : bf16
    %117 = vector.broadcast %cst_54 : bf16 to vector<32x128xbf16>
    %118 = arith.maximumf %116, %117 : vector<32x128xbf16>
    %cst_55 = arith.constant dense<0.000000e+00> : vector<16x128xf32>
    %119 = tpu.matmul %2, %118, %cst_55 {dimension_numbers = #tpu.dot_dimension_numbers<[1], [0], [0], [1], [0, 0, 1, 1], [], []>} : vector<16x32xbf16>, vector<32x128xbf16>, vector<16x128xf32> -> vector<16x128xf32>
    %120 = arith.truncf %119 : vector<16x128xf32> to vector<16x128xbf16>
    %121 = arith.addf %120, %12 : vector<16x128xbf16>
    %cst_56 = arith.constant 0.000000e+00 : bf16
    %122 = vector.broadcast %cst_56 : bf16 to vector<16x128xbf16>
    %123 = arith.maximumf %121, %122 : vector<16x128xbf16>
    %cst_57 = arith.constant dense<0.000000e+00> : vector<8x128xf32>
    %124 = tpu.matmul %3, %123, %cst_57 {dimension_numbers = #tpu.dot_dimension_numbers<[1], [0], [0], [1], [0, 0, 1, 1], [], []>} : vector<8x16xbf16>, vector<16x128xbf16>, vector<8x128xf32> -> vector<8x128xf32>
    %125 = arith.truncf %124 : vector<8x128xf32> to vector<8x128xbf16>
    %126 = arith.addf %125, %15 : vector<8x128xbf16>
    %cst_58 = arith.constant 0.000000e+00 : bf16
    %127 = vector.broadcast %cst_58 : bf16 to vector<8x128xbf16>
    %128 = arith.maximumf %126, %127 : vector<8x128xbf16>
    %129 = arith.extf %128 : vector<8x128xbf16> to vector<8x128xf32>
    %130 = arith.mulf %129, %18 : vector<8x128xf32>
    %cst_59 = arith.constant dense<0.000000e+00> : vector<128xf32>
    %131 = vector.multi_reduction <add>, %130, %cst_59 [0] : vector<8x128xf32> to vector<128xf32>
    %132 = vector.shape_cast %131 : vector<128xf32> to vector<1x128xf32>
    %133 = arith.addf %132, %21 : vector<1x128xf32>
    %cst_60 = arith.constant 0.000000e+00 : f32
    %134 = vector.broadcast %cst_60 : f32 to vector<1x128xf32>
    %135 = arith.subf %134, %133 : vector<1x128xf32>
    %136 = math.exp %135 : vector<1x128xf32>
    %cst_61 = arith.constant 1.000000e+00 : f32
    %137 = vector.broadcast %cst_61 : f32 to vector<1x128xf32>
    %138 = arith.addf %137, %136 : vector<1x128xf32>
    %cst_62 = arith.constant 1.000000e+00 : f32
    %139 = vector.broadcast %cst_62 : f32 to vector<1x128xf32>
    %140 = arith.divf %139, %138 : vector<1x128xf32>
    %c0_63 = arith.constant 0 : index
    %c0_64 = arith.constant 0 : index
    %141 = arith.index_cast %105 : i32 to index
    %142 = vector.load %arg12[%c0_63, %c0_64, %141] : memref<1x1x1024xf32, #tpu.memory_space<vmem>>, vector<1x1x128xf32>
    %143 = vector.shape_cast %142 : vector<1x1x128xf32> to vector<1x128xf32>
    %144 = vector.shape_cast %140 : vector<1x128xf32> to vector<1x1x128xf32>
    tpu.vector_store %arg12[%c0_63, %c0_64, %141], %144 {strides = array<i32>} : memref<1x1x1024xf32, #tpu.memory_space<vmem>>, vector<1x1x128xf32>,
    %c3_i32 = arith.constant 3 : i32
    %c128_i32_65 = arith.constant 128 : i32
    %145 = arith.muli %c3_i32, %c128_i32_65 : i32
    %146 = tpu.assume_multiple %145, 128 : i32
    %147 = arith.index_cast %146 : i32 to index
    %c0_66 = arith.constant 0 : index
    %148 = vector.load %arg1[%147, %c0_66] : memref<1024x32xf32, #tpu.memory_space<vmem>>, vector<128x32xf32>
    %149 = arith.truncf %148 : vector<128x32xf32> to vector<128x32xbf16>
    %cst_67 = arith.constant dense<0.000000e+00> : vector<64x128xf32>
    %150 = tpu.matmul %0, %149, %cst_67 {dimension_numbers = #tpu.dot_dimension_numbers<[1], [1], [0], [0], [0, 0, 1, 0], [], []>} : vector<64x32xbf16>, vector<128x32xbf16>, vector<64x128xf32> -> vector<64x128xf32>
    %151 = arith.truncf %150 : vector<64x128xf32> to vector<64x128xbf16>
    %152 = arith.addf %151, %6 : vector<64x128xbf16>
    %cst_68 = arith.constant 0.000000e+00 : bf16
    %153 = vector.broadcast %cst_68 : bf16 to vector<64x128xbf16>
    %154 = arith.maximumf %152, %153 : vector<64x128xbf16>
    %cst_69 = arith.constant dense<0.000000e+00> : vector<32x128xf32>
    %155 = tpu.matmul %1, %154, %cst_69 {dimension_numbers = #tpu.dot_dimension_numbers<[1], [0], [0], [1], [0, 0, 1, 1], [], []>} : vector<32x64xbf16>, vector<64x128xbf16>, vector<32x128xf32> -> vector<32x128xf32>
    %156 = arith.truncf %155 : vector<32x128xf32> to vector<32x128xbf16>
    %157 = arith.addf %156, %9 : vector<32x128xbf16>
    %cst_70 = arith.constant 0.000000e+00 : bf16
    %158 = vector.broadcast %cst_70 : bf16 to vector<32x128xbf16>
    %159 = arith.maximumf %157, %158 : vector<32x128xbf16>
    %cst_71 = arith.constant dense<0.000000e+00> : vector<16x128xf32>
    %160 = tpu.matmul %2, %159, %cst_71 {dimension_numbers = #tpu.dot_dimension_numbers<[1], [0], [0], [1], [0, 0, 1, 1], [], []>} : vector<16x32xbf16>, vector<32x128xbf16>, vector<16x128xf32> -> vector<16x128xf32>
    %161 = arith.truncf %160 : vector<16x128xf32> to vector<16x128xbf16>
    %162 = arith.addf %161, %12 : vector<16x128xbf16>
    %cst_72 = arith.constant 0.000000e+00 : bf16
    %163 = vector.broadcast %cst_72 : bf16 to vector<16x128xbf16>
    %164 = arith.maximumf %162, %163 : vector<16x128xbf16>
    %cst_73 = arith.constant dense<0.000000e+00> : vector<8x128xf32>
    %165 = tpu.matmul %3, %164, %cst_73 {dimension_numbers = #tpu.dot_dimension_numbers<[1], [0], [0], [1], [0, 0, 1, 1], [], []>} : vector<8x16xbf16>, vector<16x128xbf16>, vector<8x128xf32> -> vector<8x128xf32>
    %166 = arith.truncf %165 : vector<8x128xf32> to vector<8x128xbf16>
    %167 = arith.addf %166, %15 : vector<8x128xbf16>
    %cst_74 = arith.constant 0.000000e+00 : bf16
    %168 = vector.broadcast %cst_74 : bf16 to vector<8x128xbf16>
    %169 = arith.maximumf %167, %168 : vector<8x128xbf16>
    %170 = arith.extf %169 : vector<8x128xbf16> to vector<8x128xf32>
    %171 = arith.mulf %170, %18 : vector<8x128xf32>
    %cst_75 = arith.constant dense<0.000000e+00> : vector<128xf32>
    %172 = vector.multi_reduction <add>, %171, %cst_75 [0] : vector<8x128xf32> to vector<128xf32>
    %173 = vector.shape_cast %172 : vector<128xf32> to vector<1x128xf32>
    %174 = arith.addf %173, %21 : vector<1x128xf32>
    %cst_76 = arith.constant 0.000000e+00 : f32
    %175 = vector.broadcast %cst_76 : f32 to vector<1x128xf32>
    %176 = arith.subf %175, %174 : vector<1x128xf32>
    %177 = math.exp %176 : vector<1x128xf32>
    %cst_77 = arith.constant 1.000000e+00 : f32
    %178 = vector.broadcast %cst_77 : f32 to vector<1x128xf32>
    %179 = arith.addf %178, %177 : vector<1x128xf32>
    %cst_78 = arith.constant 1.000000e+00 : f32
    %180 = vector.broadcast %cst_78 : f32 to vector<1x128xf32>
    %181 = arith.divf %180, %179 : vector<1x128xf32>
    %c0_79 = arith.constant 0 : index
    %c0_80 = arith.constant 0 : index
    %182 = arith.index_cast %146 : i32 to index
    %183 = vector.load %arg12[%c0_79, %c0_80, %182] : memref<1x1x1024xf32, #tpu.memory_space<vmem>>, vector<1x1x128xf32>
    %184 = vector.shape_cast %183 : vector<1x1x128xf32> to vector<1x128xf32>
    %185 = vector.shape_cast %181 : vector<1x128xf32> to vector<1x1x128xf32>
    tpu.vector_store %arg12[%c0_79, %c0_80, %182], %185 {strides = array<i32>} : memref<1x1x1024xf32, #tpu.memory_space<vmem>>, vector<1x1x128xf32>,
    %c4_i32 = arith.constant 4 : i32
    %c128_i32_81 = arith.constant 128 : i32
    %186 = arith.muli %c4_i32, %c128_i32_81 : i32
    %187 = tpu.assume_multiple %186, 128 : i32
    %188 = arith.index_cast %187 : i32 to index
    %c0_82 = arith.constant 0 : index
    %189 = vector.load %arg1[%188, %c0_82] : memref<1024x32xf32, #tpu.memory_space<vmem>>, vector<128x32xf32>
    %190 = arith.truncf %189 : vector<128x32xf32> to vector<128x32xbf16>
    %cst_83 = arith.constant dense<0.000000e+00> : vector<64x128xf32>
    %191 = tpu.matmul %0, %190, %cst_83 {dimension_numbers = #tpu.dot_dimension_numbers<[1], [1], [0], [0], [0, 0, 1, 0], [], []>} : vector<64x32xbf16>, vector<128x32xbf16>, vector<64x128xf32> -> vector<64x128xf32>
    %192 = arith.truncf %191 : vector<64x128xf32> to vector<64x128xbf16>
    %193 = arith.addf %192, %6 : vector<64x128xbf16>
    %cst_84 = arith.constant 0.000000e+00 : bf16
    %194 = vector.broadcast %cst_84 : bf16 to vector<64x128xbf16>
    %195 = arith.maximumf %193, %194 : vector<64x128xbf16>
    %cst_85 = arith.constant dense<0.000000e+00> : vector<32x128xf32>
    %196 = tpu.matmul %1, %195, %cst_85 {dimension_numbers = #tpu.dot_dimension_numbers<[1], [0], [0], [1], [0, 0, 1, 1], [], []>} : vector<32x64xbf16>, vector<64x128xbf16>, vector<32x128xf32> -> vector<32x128xf32>
    %197 = arith.truncf %196 : vector<32x128xf32> to vector<32x128xbf16>
    %198 = arith.addf %197, %9 : vector<32x128xbf16>
    %cst_86 = arith.constant 0.000000e+00 : bf16
    %199 = vector.broadcast %cst_86 : bf16 to vector<32x128xbf16>
    %200 = arith.maximumf %198, %199 : vector<32x128xbf16>
    %cst_87 = arith.constant dense<0.000000e+00> : vector<16x128xf32>
    %201 = tpu.matmul %2, %200, %cst_87 {dimension_numbers = #tpu.dot_dimension_numbers<[1], [0], [0], [1], [0, 0, 1, 1], [], []>} : vector<16x32xbf16>, vector<32x128xbf16>, vector<16x128xf32> -> vector<16x128xf32>
    %202 = arith.truncf %201 : vector<16x128xf32> to vector<16x128xbf16>
    %203 = arith.addf %202, %12 : vector<16x128xbf16>
    %cst_88 = arith.constant 0.000000e+00 : bf16
    %204 = vector.broadcast %cst_88 : bf16 to vector<16x128xbf16>
    %205 = arith.maximumf %203, %204 : vector<16x128xbf16>
    %cst_89 = arith.constant dense<0.000000e+00> : vector<8x128xf32>
    %206 = tpu.matmul %3, %205, %cst_89 {dimension_numbers = #tpu.dot_dimension_numbers<[1], [0], [0], [1], [0, 0, 1, 1], [], []>} : vector<8x16xbf16>, vector<16x128xbf16>, vector<8x128xf32> -> vector<8x128xf32>
    %207 = arith.truncf %206 : vector<8x128xf32> to vector<8x128xbf16>
    %208 = arith.addf %207, %15 : vector<8x128xbf16>
    %cst_90 = arith.constant 0.000000e+00 : bf16
    %209 = vector.broadcast %cst_90 : bf16 to vector<8x128xbf16>
    %210 = arith.maximumf %208, %209 : vector<8x128xbf16>
    %211 = arith.extf %210 : vector<8x128xbf16> to vector<8x128xf32>
    %212 = arith.mulf %211, %18 : vector<8x128xf32>
    %cst_91 = arith.constant dense<0.000000e+00> : vector<128xf32>
    %213 = vector.multi_reduction <add>, %212, %cst_91 [0] : vector<8x128xf32> to vector<128xf32>
    %214 = vector.shape_cast %213 : vector<128xf32> to vector<1x128xf32>
    %215 = arith.addf %214, %21 : vector<1x128xf32>
    %cst_92 = arith.constant 0.000000e+00 : f32
    %216 = vector.broadcast %cst_92 : f32 to vector<1x128xf32>
    %217 = arith.subf %216, %215 : vector<1x128xf32>
    %218 = math.exp %217 : vector<1x128xf32>
    %cst_93 = arith.constant 1.000000e+00 : f32
    %219 = vector.broadcast %cst_93 : f32 to vector<1x128xf32>
    %220 = arith.addf %219, %218 : vector<1x128xf32>
    %cst_94 = arith.constant 1.000000e+00 : f32
    %221 = vector.broadcast %cst_94 : f32 to vector<1x128xf32>
    %222 = arith.divf %221, %220 : vector<1x128xf32>
    %c0_95 = arith.constant 0 : index
    %c0_96 = arith.constant 0 : index
    %223 = arith.index_cast %187 : i32 to index
    %224 = vector.load %arg12[%c0_95, %c0_96, %223] : memref<1x1x1024xf32, #tpu.memory_space<vmem>>, vector<1x1x128xf32>
    %225 = vector.shape_cast %224 : vector<1x1x128xf32> to vector<1x128xf32>
    %226 = vector.shape_cast %222 : vector<1x128xf32> to vector<1x1x128xf32>
    tpu.vector_store %arg12[%c0_95, %c0_96, %223], %226 {strides = array<i32>} : memref<1x1x1024xf32, #tpu.memory_space<vmem>>, vector<1x1x128xf32>,
    %c5_i32 = arith.constant 5 : i32
    %c128_i32_97 = arith.constant 128 : i32
    %227 = arith.muli %c5_i32, %c128_i32_97 : i32
    %228 = tpu.assume_multiple %227, 128 : i32
    %229 = arith.index_cast %228 : i32 to index
    %c0_98 = arith.constant 0 : index
    %230 = vector.load %arg1[%229, %c0_98] : memref<1024x32xf32, #tpu.memory_space<vmem>>, vector<128x32xf32>
    %231 = arith.truncf %230 : vector<128x32xf32> to vector<128x32xbf16>
    %cst_99 = arith.constant dense<0.000000e+00> : vector<64x128xf32>
    %232 = tpu.matmul %0, %231, %cst_99 {dimension_numbers = #tpu.dot_dimension_numbers<[1], [1], [0], [0], [0, 0, 1, 0], [], []>} : vector<64x32xbf16>, vector<128x32xbf16>, vector<64x128xf32> -> vector<64x128xf32>
    %233 = arith.truncf %232 : vector<64x128xf32> to vector<64x128xbf16>
    %234 = arith.addf %233, %6 : vector<64x128xbf16>
    %cst_100 = arith.constant 0.000000e+00 : bf16
    %235 = vector.broadcast %cst_100 : bf16 to vector<64x128xbf16>
    %236 = arith.maximumf %234, %235 : vector<64x128xbf16>
    %cst_101 = arith.constant dense<0.000000e+00> : vector<32x128xf32>
    %237 = tpu.matmul %1, %236, %cst_101 {dimension_numbers = #tpu.dot_dimension_numbers<[1], [0], [0], [1], [0, 0, 1, 1], [], []>} : vector<32x64xbf16>, vector<64x128xbf16>, vector<32x128xf32> -> vector<32x128xf32>
    %238 = arith.truncf %237 : vector<32x128xf32> to vector<32x128xbf16>
    %239 = arith.addf %238, %9 : vector<32x128xbf16>
    %cst_102 = arith.constant 0.000000e+00 : bf16
    %240 = vector.broadcast %cst_102 : bf16 to vector<32x128xbf16>
    %241 = arith.maximumf %239, %240 : vector<32x128xbf16>
    %cst_103 = arith.constant dense<0.000000e+00> : vector<16x128xf32>
    %242 = tpu.matmul %2, %241, %cst_103 {dimension_numbers = #tpu.dot_dimension_numbers<[1], [0], [0], [1], [0, 0, 1, 1], [], []>} : vector<16x32xbf16>, vector<32x128xbf16>, vector<16x128xf32> -> vector<16x128xf32>
    %243 = arith.truncf %242 : vector<16x128xf32> to vector<16x128xbf16>
    %244 = arith.addf %243, %12 : vector<16x128xbf16>
    %cst_104 = arith.constant 0.000000e+00 : bf16
    %245 = vector.broadcast %cst_104 : bf16 to vector<16x128xbf16>
    %246 = arith.maximumf %244, %245 : vector<16x128xbf16>
    %cst_105 = arith.constant dense<0.000000e+00> : vector<8x128xf32>
    %247 = tpu.matmul %3, %246, %cst_105 {dimension_numbers = #tpu.dot_dimension_numbers<[1], [0], [0], [1], [0, 0, 1, 1], [], []>} : vector<8x16xbf16>, vector<16x128xbf16>, vector<8x128xf32> -> vector<8x128xf32>
    %248 = arith.truncf %247 : vector<8x128xf32> to vector<8x128xbf16>
    %249 = arith.addf %248, %15 : vector<8x128xbf16>
    %cst_106 = arith.constant 0.000000e+00 : bf16
    %250 = vector.broadcast %cst_106 : bf16 to vector<8x128xbf16>
    %251 = arith.maximumf %249, %250 : vector<8x128xbf16>
    %252 = arith.extf %251 : vector<8x128xbf16> to vector<8x128xf32>
    %253 = arith.mulf %252, %18 : vector<8x128xf32>
    %cst_107 = arith.constant dense<0.000000e+00> : vector<128xf32>
    %254 = vector.multi_reduction <add>, %253, %cst_107 [0] : vector<8x128xf32> to vector<128xf32>
    %255 = vector.shape_cast %254 : vector<128xf32> to vector<1x128xf32>
    %256 = arith.addf %255, %21 : vector<1x128xf32>
    %cst_108 = arith.constant 0.000000e+00 : f32
    %257 = vector.broadcast %cst_108 : f32 to vector<1x128xf32>
    %258 = arith.subf %257, %256 : vector<1x128xf32>
    %259 = math.exp %258 : vector<1x128xf32>
    %cst_109 = arith.constant 1.000000e+00 : f32
    %260 = vector.broadcast %cst_109 : f32 to vector<1x128xf32>
    %261 = arith.addf %260, %259 : vector<1x128xf32>
    %cst_110 = arith.constant 1.000000e+00 : f32
    %262 = vector.broadcast %cst_110 : f32 to vector<1x128xf32>
    %263 = arith.divf %262, %261 : vector<1x128xf32>
    %c0_111 = arith.constant 0 : index
    %c0_112 = arith.constant 0 : index
    %264 = arith.index_cast %228 : i32 to index
    %265 = vector.load %arg12[%c0_111, %c0_112, %264] : memref<1x1x1024xf32, #tpu.memory_space<vmem>>, vector<1x1x128xf32>
    %266 = vector.shape_cast %265 : vector<1x1x128xf32> to vector<1x128xf32>
    %267 = vector.shape_cast %263 : vector<1x128xf32> to vector<1x1x128xf32>
    tpu.vector_store %arg12[%c0_111, %c0_112, %264], %267 {strides = array<i32>} : memref<1x1x1024xf32, #tpu.memory_space<vmem>>, vector<1x1x128xf32>,
    %c6_i32 = arith.constant 6 : i32
    %c128_i32_113 = arith.constant 128 : i32
    %268 = arith.muli %c6_i32, %c128_i32_113 : i32
    %269 = tpu.assume_multiple %268, 128 : i32
    %270 = arith.index_cast %269 : i32 to index
    %c0_114 = arith.constant 0 : index
    %271 = vector.load %arg1[%270, %c0_114] : memref<1024x32xf32, #tpu.memory_space<vmem>>, vector<128x32xf32>
    %272 = arith.truncf %271 : vector<128x32xf32> to vector<128x32xbf16>
    %cst_115 = arith.constant dense<0.000000e+00> : vector<64x128xf32>
    %273 = tpu.matmul %0, %272, %cst_115 {dimension_numbers = #tpu.dot_dimension_numbers<[1], [1], [0], [0], [0, 0, 1, 0], [], []>} : vector<64x32xbf16>, vector<128x32xbf16>, vector<64x128xf32> -> vector<64x128xf32>
    %274 = arith.truncf %273 : vector<64x128xf32> to vector<64x128xbf16>
    %275 = arith.addf %274, %6 : vector<64x128xbf16>
    %cst_116 = arith.constant 0.000000e+00 : bf16
    %276 = vector.broadcast %cst_116 : bf16 to vector<64x128xbf16>
    %277 = arith.maximumf %275, %276 : vector<64x128xbf16>
    %cst_117 = arith.constant dense<0.000000e+00> : vector<32x128xf32>
    %278 = tpu.matmul %1, %277, %cst_117 {dimension_numbers = #tpu.dot_dimension_numbers<[1], [0], [0], [1], [0, 0, 1, 1], [], []>} : vector<32x64xbf16>, vector<64x128xbf16>, vector<32x128xf32> -> vector<32x128xf32>
    %279 = arith.truncf %278 : vector<32x128xf32> to vector<32x128xbf16>
    %280 = arith.addf %279, %9 : vector<32x128xbf16>
    %cst_118 = arith.constant 0.000000e+00 : bf16
    %281 = vector.broadcast %cst_118 : bf16 to vector<32x128xbf16>
    %282 = arith.maximumf %280, %281 : vector<32x128xbf16>
    %cst_119 = arith.constant dense<0.000000e+00> : vector<16x128xf32>
    %283 = tpu.matmul %2, %282, %cst_119 {dimension_numbers = #tpu.dot_dimension_numbers<[1], [0], [0], [1], [0, 0, 1, 1], [], []>} : vector<16x32xbf16>, vector<32x128xbf16>, vector<16x128xf32> -> vector<16x128xf32>
    %284 = arith.truncf %283 : vector<16x128xf32> to vector<16x128xbf16>
    %285 = arith.addf %284, %12 : vector<16x128xbf16>
    %cst_120 = arith.constant 0.000000e+00 : bf16
    %286 = vector.broadcast %cst_120 : bf16 to vector<16x128xbf16>
    %287 = arith.maximumf %285, %286 : vector<16x128xbf16>
    %cst_121 = arith.constant dense<0.000000e+00> : vector<8x128xf32>
    %288 = tpu.matmul %3, %287, %cst_121 {dimension_numbers = #tpu.dot_dimension_numbers<[1], [0], [0], [1], [0, 0, 1, 1], [], []>} : vector<8x16xbf16>, vector<16x128xbf16>, vector<8x128xf32> -> vector<8x128xf32>
    %289 = arith.truncf %288 : vector<8x128xf32> to vector<8x128xbf16>
    %290 = arith.addf %289, %15 : vector<8x128xbf16>
    %cst_122 = arith.constant 0.000000e+00 : bf16
    %291 = vector.broadcast %cst_122 : bf16 to vector<8x128xbf16>
    %292 = arith.maximumf %290, %291 : vector<8x128xbf16>
    %293 = arith.extf %292 : vector<8x128xbf16> to vector<8x128xf32>
    %294 = arith.mulf %293, %18 : vector<8x128xf32>
    %cst_123 = arith.constant dense<0.000000e+00> : vector<128xf32>
    %295 = vector.multi_reduction <add>, %294, %cst_123 [0] : vector<8x128xf32> to vector<128xf32>
    %296 = vector.shape_cast %295 : vector<128xf32> to vector<1x128xf32>
    %297 = arith.addf %296, %21 : vector<1x128xf32>
    %cst_124 = arith.constant 0.000000e+00 : f32
    %298 = vector.broadcast %cst_124 : f32 to vector<1x128xf32>
    %299 = arith.subf %298, %297 : vector<1x128xf32>
    %300 = math.exp %299 : vector<1x128xf32>
    %cst_125 = arith.constant 1.000000e+00 : f32
    %301 = vector.broadcast %cst_125 : f32 to vector<1x128xf32>
    %302 = arith.addf %301, %300 : vector<1x128xf32>
    %cst_126 = arith.constant 1.000000e+00 : f32
    %303 = vector.broadcast %cst_126 : f32 to vector<1x128xf32>
    %304 = arith.divf %303, %302 : vector<1x128xf32>
    %c0_127 = arith.constant 0 : index
    %c0_128 = arith.constant 0 : index
    %305 = arith.index_cast %269 : i32 to index
    %306 = vector.load %arg12[%c0_127, %c0_128, %305] : memref<1x1x1024xf32, #tpu.memory_space<vmem>>, vector<1x1x128xf32>
    %307 = vector.shape_cast %306 : vector<1x1x128xf32> to vector<1x128xf32>
    %308 = vector.shape_cast %304 : vector<1x128xf32> to vector<1x1x128xf32>
    tpu.vector_store %arg12[%c0_127, %c0_128, %305], %308 {strides = array<i32>} : memref<1x1x1024xf32, #tpu.memory_space<vmem>>, vector<1x1x128xf32>,
    %c7_i32 = arith.constant 7 : i32
    %c128_i32_129 = arith.constant 128 : i32
    %309 = arith.muli %c7_i32, %c128_i32_129 : i32
    %310 = tpu.assume_multiple %309, 128 : i32
    %311 = arith.index_cast %310 : i32 to index
    %c0_130 = arith.constant 0 : index
    %312 = vector.load %arg1[%311, %c0_130] : memref<1024x32xf32, #tpu.memory_space<vmem>>, vector<128x32xf32>
    %313 = arith.truncf %312 : vector<128x32xf32> to vector<128x32xbf16>
    %cst_131 = arith.constant dense<0.000000e+00> : vector<64x128xf32>
    %314 = tpu.matmul %0, %313, %cst_131 {dimension_numbers = #tpu.dot_dimension_numbers<[1], [1], [0], [0], [0, 0, 1, 0], [], []>} : vector<64x32xbf16>, vector<128x32xbf16>, vector<64x128xf32> -> vector<64x128xf32>
    %315 = arith.truncf %314 : vector<64x128xf32> to vector<64x128xbf16>
    %316 = arith.addf %315, %6 : vector<64x128xbf16>
    %cst_132 = arith.constant 0.000000e+00 : bf16
    %317 = vector.broadcast %cst_132 : bf16 to vector<64x128xbf16>
    %318 = arith.maximumf %316, %317 : vector<64x128xbf16>
    %cst_133 = arith.constant dense<0.000000e+00> : vector<32x128xf32>
    %319 = tpu.matmul %1, %318, %cst_133 {dimension_numbers = #tpu.dot_dimension_numbers<[1], [0], [0], [1], [0, 0, 1, 1], [], []>} : vector<32x64xbf16>, vector<64x128xbf16>, vector<32x128xf32> -> vector<32x128xf32>
    %320 = arith.truncf %319 : vector<32x128xf32> to vector<32x128xbf16>
    %321 = arith.addf %320, %9 : vector<32x128xbf16>
    %cst_134 = arith.constant 0.000000e+00 : bf16
    %322 = vector.broadcast %cst_134 : bf16 to vector<32x128xbf16>
    %323 = arith.maximumf %321, %322 : vector<32x128xbf16>
    %cst_135 = arith.constant dense<0.000000e+00> : vector<16x128xf32>
    %324 = tpu.matmul %2, %323, %cst_135 {dimension_numbers = #tpu.dot_dimension_numbers<[1], [0], [0], [1], [0, 0, 1, 1], [], []>} : vector<16x32xbf16>, vector<32x128xbf16>, vector<16x128xf32> -> vector<16x128xf32>
    %325 = arith.truncf %324 : vector<16x128xf32> to vector<16x128xbf16>
    %326 = arith.addf %325, %12 : vector<16x128xbf16>
    %cst_136 = arith.constant 0.000000e+00 : bf16
    %327 = vector.broadcast %cst_136 : bf16 to vector<16x128xbf16>
    %328 = arith.maximumf %326, %327 : vector<16x128xbf16>
    %cst_137 = arith.constant dense<0.000000e+00> : vector<8x128xf32>
    %329 = tpu.matmul %3, %328, %cst_137 {dimension_numbers = #tpu.dot_dimension_numbers<[1], [0], [0], [1], [0, 0, 1, 1], [], []>} : vector<8x16xbf16>, vector<16x128xbf16>, vector<8x128xf32> -> vector<8x128xf32>
    %330 = arith.truncf %329 : vector<8x128xf32> to vector<8x128xbf16>
    %331 = arith.addf %330, %15 : vector<8x128xbf16>
    %cst_138 = arith.constant 0.000000e+00 : bf16
    %332 = vector.broadcast %cst_138 : bf16 to vector<8x128xbf16>
    %333 = arith.maximumf %331, %332 : vector<8x128xbf16>
    %334 = arith.extf %333 : vector<8x128xbf16> to vector<8x128xf32>
    %335 = arith.mulf %334, %18 : vector<8x128xf32>
    %cst_139 = arith.constant dense<0.000000e+00> : vector<128xf32>
    %336 = vector.multi_reduction <add>, %335, %cst_139 [0] : vector<8x128xf32> to vector<128xf32>
    %337 = vector.shape_cast %336 : vector<128xf32> to vector<1x128xf32>
    %338 = arith.addf %337, %21 : vector<1x128xf32>
    %cst_140 = arith.constant 0.000000e+00 : f32
    %339 = vector.broadcast %cst_140 : f32 to vector<1x128xf32>
    %340 = arith.subf %339, %338 : vector<1x128xf32>
    %341 = math.exp %340 : vector<1x128xf32>
    %cst_141 = arith.constant 1.000000e+00 : f32
    %342 = vector.broadcast %cst_141 : f32 to vector<1x128xf32>
    %343 = arith.addf %342, %341 : vector<1x128xf32>
    %cst_142 = arith.constant 1.000000e+00 : f32
    %344 = vector.broadcast %cst_142 : f32 to vector<1x128xf32>
    %345 = arith.divf %344, %343 : vector<1x128xf32>
    %c0_143 = arith.constant 0 : index
    %c0_144 = arith.constant 0 : index
    %346 = arith.index_cast %310 : i32 to index
    %347 = vector.load %arg12[%c0_143, %c0_144, %346] : memref<1x1x1024xf32, #tpu.memory_space<vmem>>, vector<1x1x128xf32>
    %348 = vector.shape_cast %347 : vector<1x1x128xf32> to vector<1x128xf32>
    %349 = vector.shape_cast %345 : vector<1x128xf32> to vector<1x1x128xf32>
    tpu.vector_store %arg12[%c0_143, %c0_144, %346], %349 {strides = array<i32>} : memref<1x1x1024xf32, #tpu.memory_space<vmem>>, vector<1x1x128xf32>,
    %c8_i32 = arith.constant 8 : i32
    return
  }
  func.func @transform_0(%arg0: i32) -> (i32, i32) {
    %c0_i32 = arith.constant 0 : i32
    %c0_i32_0 = arith.constant 0 : i32
    return %arg0, %c0_i32 : i32, i32
  }
  func.func @transform_1(%arg0: i32) -> (i32, i32) {
    %c0_i32 = arith.constant 0 : i32
    %c0_i32_0 = arith.constant 0 : i32
    %c0_i32_1 = arith.constant 0 : i32
    return %c0_i32, %c0_i32_0 : i32, i32
  }
  func.func @transform_2(%arg0: i32) -> (i32, i32) {
    %c0_i32 = arith.constant 0 : i32
    %c0_i32_0 = arith.constant 0 : i32
    %c0_i32_1 = arith.constant 0 : i32
    return %c0_i32, %c0_i32_0 : i32, i32
  }
  func.func @transform_3(%arg0: i32) -> (i32, i32) {
    %c0_i32 = arith.constant 0 : i32
    %c0_i32_0 = arith.constant 0 : i32
    %c0_i32_1 = arith.constant 0 : i32
    return %c0_i32, %c0_i32_0 : i32, i32
  }
  func.func @transform_4(%arg0: i32) -> (i32, i32) {
    %c0_i32 = arith.constant 0 : i32
    %c0_i32_0 = arith.constant 0 : i32
    %c0_i32_1 = arith.constant 0 : i32
    return %c0_i32, %c0_i32_0 : i32, i32
  }
  func.func @transform_5(%arg0: i32) -> (i32, i32) {
    %c0_i32 = arith.constant 0 : i32
    %c0_i32_0 = arith.constant 0 : i32
    %c0_i32_1 = arith.constant 0 : i32
    return %c0_i32, %c0_i32_0 : i32, i32
  }
  func.func @transform_6(%arg0: i32) -> (i32, i32) {
    %c0_i32 = arith.constant 0 : i32
    %c0_i32_0 = arith.constant 0 : i32
    %c0_i32_1 = arith.constant 0 : i32
    return %c0_i32, %c0_i32_0 : i32, i32
  }
  func.func @transform_7(%arg0: i32) -> (i32, i32) {
    %c0_i32 = arith.constant 0 : i32
    %c0_i32_0 = arith.constant 0 : i32
    %c0_i32_1 = arith.constant 0 : i32
    return %c0_i32, %c0_i32_0 : i32, i32
  }
  func.func @transform_8(%arg0: i32) -> (i32, i32) {
    %c0_i32 = arith.constant 0 : i32
    %c0_i32_0 = arith.constant 0 : i32
    %c0_i32_1 = arith.constant 0 : i32
    return %c0_i32, %c0_i32_0 : i32, i32
  }
  func.func @transform_9(%arg0: i32) -> (i32, i32) {
    %c0_i32 = arith.constant 0 : i32
    %c0_i32_0 = arith.constant 0 : i32
    %c0_i32_1 = arith.constant 0 : i32
    return %c0_i32, %c0_i32_0 : i32, i32
  }
  func.func @transform_10(%arg0: i32) -> (i32, i32) {
    %c0_i32 = arith.constant 0 : i32
    %c0_i32_0 = arith.constant 0 : i32
    %c0_i32_1 = arith.constant 0 : i32
    return %c0_i32, %c0_i32_0 : i32, i32
  }
  func.func @transform_11(%arg0: i32) -> (i32, i32, i32) {
    %c0_i32 = arith.constant 0 : i32
    %c0_i32_0 = arith.constant 0 : i32
    %c0_i32_1 = arith.constant 0 : i32
    return %arg0, %c0_i32, %c0_i32_0 : i32, i32, i32
  }
}

</mosaic_0001>

<bundles_post_ra>
// kernel: tpu_custom_call.1
= control target key start
LH: loop header
LB: loop body
LE: loop exit
PB: predicated region body
PF: predicated region fallthrough
CT: control target
= control target key end

     0   :  { %s5051_s0 = inlined_call_operand.vmem [shape: f32[2048,32], index: 0, kind: input, shape index: {}]   ;;  %s5052_s1 = inlined_call_operand.vmem [shape: bf16[64,32], index: 1, kind: input, shape index: {}]   ;;  %s5053_s2 = inlined_call_operand.vmem [shape: bf16[64,1], index: 2, kind: input, shape index: {}]   ;;  %s5054_s3 = inlined_call_operand.vmem [shape: bf16[32,64], index: 3, kind: input, shape index: {}]   ;;  %s5055_s4 = inlined_call_operand.vmem [shape: bf16[32,1], index: 4, kind: input, shape index: {}]   ;;  %s5056_s5 = inlined_call_operand.vmem [shape: bf16[16,32], index: 5, kind: input, shape index: {}]   ;;  %s5057_s6 = inlined_call_operand.vmem [shape: bf16[16,1], index: 6, kind: input, shape index: {}]   ;;  %s5058_s7 = inlined_call_operand.vmem [shape: bf16[8,16], index: 7, kind: input, shape index: {}]   ;;  %s5059_s8 = inlined_call_operand.vmem [shape: bf16[8,1], index: 8, kind: input, shape index: {}]   ;;  %s5060_s9 = inlined_call_operand.vmem [shape: f32[8,1], index: 9, kind: input, shape index: {}]   ;;  %s5061_s10 = inlined_call_operand.<no memory space> [shape: f32[1,1], index: 10, kind: input, shape index: {}]   ;;  %s5062_s11 = inlined_call_operand.hbm [shape: f32[2,1,1024], index: 11, kind: output, shape index: {}]  }
   0x1   :  { %v16_v0 = vstv %s5061_s10 }
   0x2   :  { %17 = vst [vmem:[#allocation2] sm:$0x1] %v16_v0 }
   0x3   :  { %18 = vsyncpa [#allocation4], 0 }
   0x4   :  { %20 = vsyncpa [#allocation4 + $0x1], 0  ;;  %s4158_s19 = smov 0   ;;  %s4160_s20 = smov 0  }
   0x5   :  { %s4162_s21 = smov 0   ;;  %s4164_s22 = smov 0  }
   0x6 LB: > { %s3075_s10 = sadd.s32 4294967295, %s4088_s22   ;;  %s3076_s23 = sadd.s32 4294967294, %s4088_s22   ;;  %s4088_s22 = sphi %s4164_s22, %s5070_s22   ;;  %s4084_s21 = sphi %s4162_s21, %s5069_s21   ;;  %s4080_s20 = sphi %s4160_s20, %s5068_s20   ;;  %s4076_s19 = sphi %s4158_s19, %s5067_s19  }
   0x7   : > { %s4181_s24 = sadd.s32 1, %s4088_s22   ;;  %s269_s25 = sadd.s32 1, %s4084_s21 }
   0x8   : > { %s266_s26 = ssub.s32 %s4088_s22, %s4181_s24  ;;  %p279_p0 = scmp.ne.s32.totalorder %s4084_s21, %s4080_s20 }
   0x9   : > { %p267_p1 = scmp.eq.s32.totalorder %s266_s26, 0  ;;  %p280_p2 = scmp.eq.s32.totalorder %s3075_s10, 1 }
   0xa   : > { %p285_p3 = scmp.ne.s32.totalorder %s4080_s20, %s4076_s19  ;;  %p286_p4 = scmp.eq.s32.totalorder %s3076_s23, 1 }
   0xb   : > { %s4191_s27 = scalar_select %p267_p1, %s4084_s21, %s269_s25  }
   0xc   : > { %p4193_p5 = por %p280_p2, %p279_p0  ;;  %p4197_p6 = por %p286_p4, %p285_p3 }
   0xd   : > { %p3079_p7 = scmp.ge.s32.totalorder %s4088_s22, 1  ;;  %p343_p8 = scmp.lt.s32.totalorder %s4088_s22, 3 }
   0xf   : > { %p344_p9 = pnand %p3079_p7, %p343_p8 }
  0x10   : > { %s4203_s30 = sshll.u32 (!%p344_p9), %s3075_s10, 7  ;;  %v4209_v1 = vld [vmem:[%s5052_s1] sm:$0xff] (!%p344_p9)   ;;  %vm660_vm0 = vcmask (!%p344_p9), 261120   ;;  %v4090_v2 = vmov (!%p344_p9), 0   ;;  %v407_v4 = vld [vmem:[%s5053_s2 + $0x8] sm:$0xf] (!%p344_p9)  ;;  %v421_v58 = vlaneseq (!%p344_p9) }
  0x11   : > { %347 = sbr.rel (%p344_p9) target bundleno = 6360 (0x18d8), region = 64  ;;  %p384_p10 = scmp.lt.s32.totalorder (!%p344_p9), %s4203_s30, 255  ;;  %3486 = vmatprep.mubr.msk.bf16.mxu0 (!%p344_p9), %vm660_vm0, %v4209_v1  ;;  %3977 = vset.pattern.permute.xlu0 (!%p344_p9), %v4090_v2  ;;  %v405_v3 = vld [vmem:[%s5053_s2] sm:$0xf] (!%p344_p9)  ;;  %v406_v5 = vld [vmem:[%s5053_s2 + $0x4] sm:$0xf] (!%p344_p9) }
  0x12   : > { %3978 = vset.pattern.permute.xlu1 (!%p344_p9), %v4090_v2  ;;  %415 = vperm.xlu0 (!%p344_p9), %3977, %v405_v3   ;;  %v408_v6 = vld [vmem:[%s5053_s2 + $0xc] sm:$0xf] (!%p344_p9)  ;;  %v409_v14 = vld [vmem:[%s5053_s2 + $0x10] sm:$0xf] (!%p344_p9)  ;;  %v410_v15 = vld [vmem:[%s5053_s2 + $0x14] sm:$0xf] (!%p344_p9)  ;;  %s5004_s10 = scalar_lea.hbm (!%p344_p9), %s5062_s11, %s4203_s30 }
  0x13   : > { %439 = vperm.xlu1 (!%p344_p9), %3978, %v407_v4   ;;  %v411_v18 = vld [vmem:[%s5053_s2 + $0x18] sm:$0xf] (!%p344_p9)  ;;  %v412_v19 = vld [vmem:[%s5053_s2 + $0x1c] sm:$0xf] (!%p344_p9)  ;;  %v509_v22 = vld [vmem:[%s5055_s4] sm:$0xf] (!%p344_p9) }
  0x14   : > { %v510_v23 = vld [vmem:[%s5055_s4 + $0x4] sm:$0xf] (!%p344_p9)  ;;  %v511_v26 = vld [vmem:[%s5055_s4 + $0x8] sm:$0xf] (!%p344_p9)  ;;  %v512_v27 = vld [vmem:[%s5055_s4 + $0xc] sm:$0xf] (!%p344_p9) }
  0x15   : > { %v561_v30 = vld [vmem:[%s5057_s6] sm:$0xf] (!%p344_p9)  ;;  %v562_v31 = vld [vmem:[%s5057_s6 + $0x4] sm:$0xf] (!%p344_p9)  ;;  %v4304_v52 = vld [vmem:[%s5052_s1 + $0x8] sm:$0xff] (!%p344_p9)   ;;  %vm808_vm1 = vcmask (!%p344_p9), 523264  }
  0x16   : > { %427 = vperm.xlu0 (!%p344_p9), %3977, %v406_v5   ;;  %v587_v34 = vld [vmem:[%s5059_s8] sm:$0xf] (!%p344_p9)  ;;  %v4309_v53 = vld [vmem:[%s5052_s1 + $0x10] sm:$0xff] (!%p344_p9)   ;;  %v4318_v54 = vld [vmem:[%s5052_s1 + $0x18] sm:$0xff] (!%p344_p9)   ;;  %v4091_v56 = vmov (!%p344_p9), 839922192  }
  0x17   : > { %451 = vperm.xlu1 (!%p344_p9), %3978, %v408_v6   ;;  %v600_v35 = vld [vmem:[%s5060_s9] sm:$0xff] (!%p344_p9)  ;;  %v419_v57 = vunpack.c.l.s4 (!%p344_p9), %v4091_v56  ;;  %v4332_v62 = vshrl.u32 (!%p344_p9), %v421_v58, 7  ;;  %vm4093_vm2 = vmmov (!%p344_p9), 0   ;;  %vm940_vm3 = vcmask (!%p344_p9), 130048   ;;  %s4094_s12 = smov (!%p344_p9), [#allocation3]  }
  0x18   : > { %s385_s14 = scalar_select %p384_p10, %s4203_s30, 255  ;;  %v606_v38 = vld [vmem:[#allocation2] sm:$0x1]  ;;  %vm4465_vm4 = vcmp.lt.s32.totalorder %v421_v58, 128 }
  0x19   : > { %v4325_v55 = vld [vmem:[%s5054_s3] sm:$0xff]   ;;  %v420_v61 = vunpack.c.0.s8 %v419_v57  ;;  %s4030_s13 = sshll.u32 %s4094_s12, 4  ;;  %s4031_s13 = int_to_ptr.vmem [resolvable:$false] %s4030_s13 }
  0x1a   : > { %s3082_s17 = sshll.u32 %s385_s14, 3  ;;  %463 = vperm.xlu0 %3977, %v409_v14   ;;  %3502 = vmatprep.mubr.msk.bf16.mxu1 %vm808_vm1, %v4325_v55  ;;  %s380_s14 = sand.u32 1, %s4080_s20  }
  0x1b   : > { %s4225_s26 = scalar_lea.vmem %s5051_s0, %s3082_s17  ;;  %475 = vperm.xlu1 %3978, %v410_v15   ;;  %v4335_v3 = vsub.s32 %v420_v61, %v4332_v62  ;;  %s3080_s15 = sshll.u32 %s380_s14, 3 }
  0x1c   : > { %v616_v7 = vld [vmem:[%s4225_s26] sm:$0xff]  ;;  %v617_v8 = vld [vmem:[%s4225_s26 + $0x8] sm:$0xff]  ;;  %v618_v9 = vld [vmem:[%s4225_s26 + $0x10] sm:$0xff]  ;;  %s4469_s16 = scalar_lea.vmem [#allocation3], %s3080_s15  ;;  %s3003_s23 = scalar_lea.sflag [#allocation4], %s380_s14 }
  0x1d   : > { %v632_v10 = vpack.c.bf16 %v617_v8, %v616_v7  ;;  %v619_v11 = vld [vmem:[%s4225_s26 + $0x18] sm:$0xff]  ;;  %v620_v16 = vld [vmem:[%s4225_s26 + $0x20] sm:$0xff]  ;;  %v621_v17 = vld [vmem:[%s4225_s26 + $0x28] sm:$0xff]  ;;  %s4032_s30 = scalar_lea.vmem %s4031_s13, 256 }
  0x1e   : > { %v633_v12 = vpack.c.bf16 %v619_v11, %v618_v9  ;;  %v634_v21 = vpack.c.bf16 %v621_v17, %v620_v16  ;;  %487 = vperm.xlu0 %3977, %v411_v18   ;;  %v622_v24 = vld [vmem:[%s4225_s26 + $0x30] sm:$0xff]  ;;  %v623_v25 = vld [vmem:[%s4225_s26 + $0x38] sm:$0xff]  ;;  %v624_v32 = vld [vmem:[%s4225_s26 + $0x40] sm:$0xff] }
  0x1f   : > { %3870 = vmatprep.subr.msk.bf16.mxu0 %vm660_vm0, %v632_v10  ;;  %v674_v13 = vsel %vm660_vm0, %v632_v10, 0  ;;  %499 = vperm.xlu1 %3978, %v412_v19   ;;  %v635_v29 = vpack.c.bf16 %v623_v25, %v622_v24  ;;  %v625_v33 = vld [vmem:[%s4225_s26 + $0x48] sm:$0xff]  ;;  %v626_v39 = vld [vmem:[%s4225_s26 + $0x50] sm:$0xff]  ;;  %v627_v40 = vld [vmem:[%s4225_s26 + $0x58] sm:$0xff] }
  0x20   : > { %3471 = vmatpush3.bf16.xpose.msra.mxu0 %v674_v13  ;;  %v677_v20 = vsel %vm660_vm0, %v633_v12, 0  ;;  %v680_v28 = vsel %vm660_vm0, %v634_v21, 0  ;;  %v636_v37 = vpack.c.bf16 %v625_v33, %v624_v32  ;;  %v637_v42 = vpack.c.bf16 %v627_v40, %v626_v39  ;;  %v628_v43 = vld [vmem:[%s4225_s26 + $0x60] sm:$0xff]  ;;  %v629_v44 = vld [vmem:[%s4225_s26 + $0x68] sm:$0xff]  ;;  %v630_v47 = vld [vmem:[%s4225_s26 + $0x70] sm:$0xff] }
  0x21   : > { %3871 = vmatprep.subr.msk.bf16.mxu0 %vm660_vm0, %v633_v12  ;;  %v683_v36 = vsel %vm660_vm0, %v635_v29, 0  ;;  %v638_v46 = vpack.c.bf16 %v629_v44, %v628_v43  ;;  %v631_v48 = vld [vmem:[%s4225_s26 + $0x78] sm:$0xff]  ;;  %v4364_v40 = vld [vmem:[%s5054_s3 + $0x8] sm:$0xff]  }
  0x22   : > { %515 = vperm.xlu0 %3977, %v509_v22   ;;  %v686_v41 = vsel %vm660_vm0, %v636_v37, 0  ;;  %v689_v45 = vsel %vm660_vm0, %v637_v42, 0  ;;  %v639_v50 = vpack.c.bf16 %v631_v48, %v630_v47 }
  0x23   : > { %527 = vperm.xlu1 %3978, %v510_v23   ;;  %v692_v49 = vsel %vm660_vm0, %v638_v46, 0 }
  0x24   : > { %v695_v51 = vsel %vm660_vm0, %v639_v50, 0 }
  0x26   : > { %539 = vperm.xlu0 %3977, %v511_v26  }
  0x27   : > { %551 = vperm.xlu1 %3978, %v512_v27  }
  0x28   : > { %3473 = vmatpush3.bf16.xpose.msra.mxu0 %v677_v20 }
  0x29   : > { %3872 = vmatprep.subr.msk.bf16.mxu0 %vm660_vm0, %v634_v21 }
  0x2a   : > { %565 = vperm.xlu0 %3977, %v561_v30  }
  0x2b   : > { %577 = vperm.xlu1 %3978, %v562_v31  }
  0x2e   : > { %590 = vperm.xlu0 %3977, %v587_v34  }
  0x2f   : > { %603 = vperm.xlu1 %3978, %v600_v35  }
  0x30   : > { %3475 = vmatpush3.bf16.xpose.msra.mxu0 %v680_v28 }
  0x31   : > { %3873 = vmatprep.subr.msk.bf16.mxu0 %vm660_vm0, %v635_v29 }
  0x32   : > { %609 = vperm.xlu0 %3977, %v606_v38  }
  0x38   : > { %3477 = vmatpush3.bf16.xpose.msra.mxu0 %v683_v36 }
  0x39   : > { %3874 = vmatprep.subr.msk.bf16.mxu0 %vm660_vm0, %v636_v37 }
  0x40   : > { %3479 = vmatpush3.bf16.xpose.msra.mxu0 %v686_v41  ;;  %v4092_v41 = vmov 0.0  }
  0x41   : > { %3875 = vmatprep.subr.msk.bf16.mxu0 %vm660_vm0, %v637_v42 }
  0x48   : > { %3481 = vmatpush3.bf16.xpose.msra.mxu0 %v689_v45 }
  0x49   : > { %3876 = vmatprep.subr.msk.bf16.mxu0 %vm660_vm0, %v638_v46 }
  0x50   : > { %3483 = vmatpush3.bf16.xpose.msra.mxu0 %v692_v49 }
  0x51   : > { %3877 = vmatprep.subr.msk.bf16.mxu0 %vm660_vm0, %v639_v50 }
  0x58   : > { %3485 = vmatpush3.bf16.xpose.msra.mxu0 %v695_v51 }
  0x5f   : > { %3487 = vmatmul.mubr.msk.bf16.vlgmr.msra.gmra.mrb[0].mxu0 %vm660_vm0, %v4304_v52 }
  0x60   : > { %3490 = vmatprep.mubr.msk.bf16.mxu0 %vm660_vm0, %v4309_v53 }
  0x67   : > { %3491 = vmatmul.mubr.msk.bf16.gmra.mrb[4].mxu0 %vm660_vm0, %v4318_v54 }
  0x68   : > { %3552 = vmatprep.mubr.msk.bf16.mxu0 %vm808_vm1, %v4325_v55 }
  0x91   : > { %v416_v59 = vpop.permute.xlu0 %415 }
  0x92   : > { %v440_v60 = vpop.permute.xlu1 %439  ;;  %v424_v6 = vrot.slane %v416_v59, %v4335_v3 }
  0x93   : > { %v448_v4 = vrot.slane %v440_v60, %v4335_v3 }
  0x95   : > { %v428_v63 = vpop.permute.xlu0 %427 }
  0x96   : > { %v452_v0 = vpop.permute.xlu1 %451  ;;  %v436_v7 = vrot.slane %v428_v63, %v4335_v3 }
  0x97   : > { %v460_v5 = vrot.slane %v452_v0, %v4335_v3 }
  0x98   : > { %v4343_v16 = vcombine.low %v424_v6, %v436_v7  ;;  %v4387_v7 = vld [vmem:[%s5056_s5] sm:$0xff]  }
  0x99   : > { %v464_v8 = vpop.permute.xlu0 %463  ;;  %v4341_v12 = vcombine.low %v448_v4, %v460_v5 }
  0x9a   : > { %v476_v10 = vpop.permute.xlu1 %475  ;;  %v472_v20 = vrot.slane %v464_v8, %v4335_v3 }
  0x9b   : > { %v484_v24 = vrot.slane %v476_v10, %v4335_v3 }
  0x9d   : > { %v488_v21 = vpop.permute.xlu0 %487  ;;  %v4353_v33 = vcombine.low %v472_v20, %v484_v24  ;;  %v3105_v20 = vld [vmem:[%s4225_s26 + $0x80] sm:$0xff] }
  0x9e   : > { %v500_v22 = vpop.permute.xlu1 %499  ;;  %v496_v23 = vrot.slane %v488_v21, %v4335_v3  ;;  %v3106_v21 = vld [vmem:[%s4225_s26 + $0x88] sm:$0xff] }
  0x9f   : > { %v508_v25 = vrot.slane %v500_v22, %v4335_v3 }
  0xa1   : > { %v4355_v34 = vcombine.low %v496_v23, %v508_v25  ;;  %v516_v42 = vpop.permute.xlu0 %515  ;;  %v1024_v23 = vpack.c.bf16 %v3106_v21, %v3105_v20  ;;  %v4405_v25 = vld [vmem:[%s5058_s7] sm:$0xf] }
  0xa2   : > { %v528_v43 = vpop.permute.xlu1 %527  ;;  %v524_v44 = vrot.slane %v516_v42, %v4335_v3  ;;  %v3113_v42 = vld [vmem:[%s4225_s26 + $0xc0] sm:$0xff] }
  0xa3   : > { %v536_v46 = vrot.slane %v528_v43, %v4335_v3  ;;  %v3114_v43 = vld [vmem:[%s4225_s26 + $0xc8] sm:$0xff] }
  0xa5   : > { %v540_v45 = vpop.permute.xlu0 %539  ;;  %v4375_v60 = vcombine.low %v524_v44, %v536_v46  ;;  %v3115_v46 = vld [vmem:[%s4225_s26 + $0xd0] sm:$0xff] }
  0xa6   : > { %v552_v48 = vpop.permute.xlu1 %551  ;;  %v548_v50 = vrot.slane %v540_v45, %v4335_v3  ;;  %v1028_v45 = vpack.c.bf16 %v3114_v43, %v3113_v42 }
  0xa7   : > { %v560_v51 = vrot.slane %v552_v48, %v4335_v3 }
  0xa8   : > { %v1045_v48 = vsel %vm660_vm0, %v1028_v45, 0 }
  0xa9   : > { %v4377_v63 = vcombine.low %v548_v50, %v560_v51  ;;  %v3117_v50 = vld [vmem:[%s4225_s26 + $0xe0] sm:$0xff]  ;;  %v3118_v51 = vld [vmem:[%s4225_s26 + $0xe8] sm:$0xff] }
  0xaa   : > { %v578_v8 = vpop.permute.xlu1 %577 }
  0xae   : > { %v4454_v20 = vpop.permute.xlu1 %603 }
 0x132   : > { %v3488_v9 = vpop.f32.mrb[0].mxu0 }
 0x133   : > { %v731_v11 = vpop.f32.mrb[1].mxu0 }
 0x134   : > { %v3489_v13 = vpop.f32.mrb[2].mxu0 }
 0x135   : > { %v763_v14 = vpack.c.bf16 %v3489_v13, %v3488_v9  ;;  %v734_v15 = vpop.f32.mrb[3].mxu0  ;;  %v566_v9 = vpop.permute.xlu0 %565 }
 0x136   : > { %v762_v17 = vpack.c.bf16 %v734_v15, %v731_v11  ;;  %v574_v10 = vrot.slane %v566_v9, %v4335_v3  ;;  %v586_v11 = vrot.slane %v578_v8, %v4335_v3 }
 0x137   : > { %v791_v18 = vadd.bf16 %v4341_v12, %v763_v14 }
 0x138   : > { %v790_v19 = vadd.bf16 %v4343_v16, %v762_v17  ;;  %v4396_v17 = vcombine.low %v574_v10, %v586_v11 }
 0x139   : > { %v795_v30 = vmax.bf16 %v4090_v2, %v791_v18 }
 0x13a   : > { %v3492_v26 = vpop.f32.mrb[4].mxu0  ;;  %v794_v27 = vmax.bf16 %v4090_v2, %v790_v19 }
 0x13b   : > { %v747_v28 = vpop.f32.mrb[5].mxu0 }
 0x13c   : > { %v3493_v29 = vpop.f32.mrb[6].mxu0  ;;  %3494 = vmatprep.subr.bf16.mxu1 %v794_v27 }
 0x13d   : > { %v765_v31 = vpack.c.bf16 %v3493_v29, %v3492_v26  ;;  %v750_v32 = vpop.f32.mrb[7].mxu0  ;;  %3495 = vmatpush3.bf16.msra.mxu1 %v794_v27  ;;  %v3107_v26 = vld [vmem:[%s4225_s26 + $0x90] sm:$0xff]  ;;  %v3108_v27 = vld [vmem:[%s4225_s26 + $0x98] sm:$0xff] }
 0x13e   : > { %v764_v35 = vpack.c.bf16 %v750_v32, %v747_v28  ;;  %3496 = vmatprep.subr.bf16.mxu1 %v795_v30  ;;  %v1033_v28 = vsel %vm660_vm0, %v1024_v23, 0  ;;  %v1025_v29 = vpack.c.bf16 %v3108_v27, %v3107_v26 }
 0x13f   : > { %v793_v36 = vadd.bf16 %v4355_v34, %v765_v31  ;;  %v3110_v31 = vld [vmem:[%s4225_s26 + $0xa8] sm:$0xff] }
 0x140   : > { %v792_v37 = vadd.bf16 %v4353_v33, %v764_v35  ;;  %v1036_v32 = vsel %vm660_vm0, %v1025_v29, 0 }
 0x141   : > { %3497 = vmatpush3.bf16.msra.mxu1 %v795_v30  ;;  %v797_v39 = vmax.bf16 %v4090_v2, %v793_v36  ;;  %v3109_v30 = vld [vmem:[%s4225_s26 + $0xa0] sm:$0xff]  ;;  %v3111_v36 = vld [vmem:[%s4225_s26 + $0xb0] sm:$0xff] }
 0x142   : > { %v796_v38 = vmax.bf16 %v4090_v2, %v792_v37  ;;  %v1026_v35 = vpack.c.bf16 %v3110_v31, %v3109_v30  ;;  %v3112_v37 = vld [vmem:[%s4225_s26 + $0xb8] sm:$0xff] }
 0x144   : > { %3498 = vmatprep.subr.bf16.mxu1 %v796_v38 }
 0x145   : > { %3499 = vmatpush3.bf16.msra.mxu1 %v796_v38  ;;  %v1039_v38 = vsel %vm660_vm0, %v1026_v35, 0 }
 0x146   : > { %3500 = vmatprep.subr.bf16.mxu1 %v797_v39 }
 0x149   : > { %3501 = vmatpush3.bf16.msra.mxu1 %v797_v39  ;;  %v1027_v39 = vpack.c.bf16 %v3112_v37, %v3111_v36 }
 0x14a   : > { %3506 = vmatprep.subr.bf16.mxu1 %v4092_v41 }
 0x14b   : > { %v1042_v44 = vsel %vm660_vm0, %v1027_v39, 0 }
 0x14c   : > { %3503 = vmatmul.mubr.msk.bf16.vlgmr.msra.gmra.mrb[0].mxu1 %vm808_vm1, %v4364_v40 }
 0x14d   : > { %3510 = vmatprep.mubr.msk.bf16.mxu1 %vm4093_vm2, %v4092_v41 }
 0x21f   : > { %v3504_v47 = vpop.f32.mrb[0].mxu1 }
 0x220   : > { %v849_v49 = vpop.f32.mrb[1].mxu1 }
 0x221   : > { %v3505_v56 = vpop.f32.mrb[2].mxu1 }
 0x222   : > { %v865_v57 = vpack.c.bf16 %v3505_v56, %v3504_v47  ;;  %v852_v59 = vpop.f32.mrb[3].mxu1  ;;  %v3116_v47 = vld [vmem:[%s4225_s26 + $0xd8] sm:$0xff] }
 0x223   : > { %v864_v61 = vpack.c.bf16 %v852_v59, %v849_v49  ;;  %v1029_v49 = vpack.c.bf16 %v3116_v47, %v3115_v46  ;;  %v3119_v59 = vld [vmem:[%s4225_s26 + $0xf0] sm:$0xff] }
 0x224   : > { %v879_v4 = vadd.bf16 %v4377_v63, %v865_v57  ;;  %v1030_v57 = vpack.c.bf16 %v3118_v51, %v3117_v50 }
 0x225   : > { %v878_v0 = vadd.bf16 %v4375_v60, %v864_v61  ;;  %v1048_v56 = vsel %vm660_vm0, %v1029_v49, 0  ;;  %v3120_v61 = vld [vmem:[%s4225_s26 + $0xf8] sm:$0xff] }
 0x226   : > { %v881_v6 = vmax.bf16 %v4090_v2, %v879_v4  ;;  %v1031_v4 = vpack.c.bf16 %v3120_v61, %v3119_v59 }
 0x227   : > { %v880_v5 = vmax.bf16 %v4090_v2, %v878_v0  ;;  %v1051_v0 = vsel %vm660_vm0, %v1030_v57, 0 }
 0x229   : > { %3507 = vmatpush3.bf16.msra.mxu1 %v880_v5  ;;  %v1054_v5 = vsel %vm660_vm0, %v1031_v4, 0 }
 0x22a   : > { %3508 = vmatprep.subr.bf16.mxu1 %v4092_v41 }
 0x22d   : > { %3509 = vmatpush3.bf16.msra.mxu1 %v881_v6  ;;  %v591_v6 = vpop.permute.xlu0 %590 }
 0x22e   : > { %3514 = vmatprep.subr.bf16.mxu1 %v4092_v41  ;;  %v4450_v9 = vrot.slane %v591_v6, %v4335_v3  ;;  %v614_v3 = vsub.s32 0, %v4332_v62 }
 0x230   : > { %3511 = vmatmul.mubr.msk.bf16.vlgmr.msra.gmra.mrb[4].mxu1 %vm660_vm0, %v4387_v7 }
 0x231   : > { %3516 = vmatprep.mubr.msk.bf16.mxu1 %vm4093_vm2, %v4092_v41  ;;  %v610_v27 = vpop.permute.xlu0 %609 }
 0x303   : > { %v924_v13 = vpop.f32.mrb[4].mxu1 }
 0x304   : > { %v3512_v14 = vpop.f32.mrb[5].mxu1 }
 0x305   : > { %v927_v15 = vpop.f32.mrb[6].mxu1 }
 0x306   : > { %v931_v18 = vpack.c.bf16 %v927_v15, %v924_v13  ;;  %v3513_v19 = vpop.f32.mrb[7].mxu1 }
 0x308   : > { %v938_v22 = vadd.bf16 %v4396_v17, %v931_v18 }
 0x30a   : > { %v939_v24 = vmax.bf16 %v4090_v2, %v938_v22 }
 0x30c   : > { %3515 = vmatpush3.bf16.msra.mxu1 %v939_v24 }
 0x30d   : > { %3878 = vmatprep.subr.msk.bf16.mxu1 %vm660_vm0, %v1024_v23 }
 0x30f   : > { %3517 = vmatmul.mubr.msk.bf16.vlgmr.msra.gmra.mrb[8].mxu1 %vm940_vm3, %v4405_v25 }
 0x310   : > { %3536 = vmatprep.mubr.msk.bf16.mxu1 %vm660_vm0, %v4209_v1 }
 0x315   : > { %3521 = vmatpush3.bf16.xpose.msra.mxu1 %v1033_v28 }
 0x316   : > { %3879 = vmatprep.subr.msk.bf16.mxu1 %vm660_vm0, %v1025_v29  ;;  %v4458_v29 = vrot.slane %v610_v27, %v614_v3 }
 0x31d   : > { %3523 = vmatpush3.bf16.xpose.msra.mxu1 %v1036_v32 }
 0x31e   : > { %3880 = vmatprep.subr.msk.bf16.mxu1 %vm660_vm0, %v1026_v35 }
 0x325   : > { %3525 = vmatpush3.bf16.xpose.msra.mxu1 %v1039_v38 }
 0x326   : > { %3881 = vmatprep.subr.msk.bf16.mxu1 %vm660_vm0, %v1027_v39 }
 0x32d   : > { %3527 = vmatpush3.bf16.xpose.msra.mxu1 %v1042_v44 }
 0x32e   : > { %3882 = vmatprep.subr.msk.bf16.mxu1 %vm660_vm0, %v1028_v45 }
 0x335   : > { %3529 = vmatpush3.bf16.xpose.msra.mxu1 %v1045_v48 }
 0x336   : > { %3883 = vmatprep.subr.msk.bf16.mxu1 %vm660_vm0, %v1029_v49 }
 0x33d   : > { %3531 = vmatpush3.bf16.xpose.msra.mxu1 %v1048_v56 }
 0x33e   : > { %3884 = vmatprep.subr.msk.bf16.mxu1 %vm660_vm0, %v1030_v57 }
 0x345   : > { %3533 = vmatpush3.bf16.xpose.msra.mxu1 %v1051_v0 }
 0x346   : > { %3885 = vmatprep.subr.msk.bf16.mxu1 %vm660_vm0, %v1031_v4 }
 0x34d   : > { %3535 = vmatpush3.bf16.xpose.msra.mxu1 %v1054_v5 }
 0x354   : > { %3537 = vmatmul.mubr.msk.bf16.vlgmr.msra.gmra.mrb[12].mxu1 %vm660_vm0, %v4304_v52 }
 0x355   : > { %3540 = vmatprep.mubr.msk.bf16.mxu1 %vm660_vm0, %v4309_v53 }
 0x35c   : > { %3541 = vmatmul.mubr.msk.bf16.gmra.mrb[16].mxu1 %vm660_vm0, %v4318_v54 }
 0x35d   : > { %3602 = vmatprep.mubr.msk.bf16.mxu1 %vm808_vm1, %v4325_v55 }
 0x3e2   : > { %v978_v8 = vpop.f32.mrb[8].mxu1 }
 0x3e3   : > { %v984_v10 = vpack.c.bf16 %v978_v8, %v978_v8  ;;  %v3518_v11 = vpop.f32.mrb[9].mxu1 }
 0x3e4   : > { %v981_v13 = vpop.f32.mrb[10].mxu1 }
 0x3e5   : > { %v985_v14 = vadd.bf16 %v984_v10, %v4450_v9  ;;  %v3519_v15 = vpop.f32.mrb[11].mxu1 }
 0x3e7   : > { %v986_v18 = vmax.bf16 %v4090_v2, %v985_v14 }
 0x3e9   : > { %v987_v19 = vunpack.c.l.bf16 %v986_v18 }
 0x3eb   : > { %v988_v21 = vmul.f32 %v987_v19, %v4454_v20 }
 0x3ed   : > { %v989_v22 = vrot.slane %v988_v21, 4 }
 0x3ef   : > { %v990_v23 = vadd.f32 %v989_v22, %v988_v21 }
 0x3f1   : > { %v991_v24 = vrot.slane %v990_v23, 2 }
 0x3f3   : > { %v992_v26 = vadd.f32 %v991_v24, %v990_v23 }
 0x3f5   : > { %v993_v28 = vrot.slane %v992_v26, 1 }
 0x3f7   : > { %v994_v30 = vadd.f32 %v993_v28, %v992_v26  ;;  %v3130_v28 = vld [vmem:[%s4225_s26 + $0x100] sm:$0xff] }
 0x3f9   : > { %v995_v31 = vadd.f32 %v994_v30, %v4458_v29  ;;  %v3131_v30 = vld [vmem:[%s4225_s26 + $0x108] sm:$0xff] }
 0x3fb   : > { %v996_v32 = vsub.f32 0.0, %v995_v31 }
 0x3fd   : > { %v997_v35 = vmul.f32 1.442695, %v996_v32  ;;  %v1309_v32 = vpack.c.bf16 %v3131_v30, %v3130_v28 }
 0x3ff   : > { %3986 = vpow2.f32 %v997_v35 }
 0x409   : > { %v3987_v36 = vpop.eup %3986 }
 0x40a   : > { %v999_v37 = vadd.f32 1.0, %v3987_v36  ;;  %v3132_v36 = vld [vmem:[%s4225_s26 + $0x110] sm:$0xff] }
 0x40c   : > { %3988 = vrcp.f32 %v999_v37  ;;  %v3133_v37 = vld [vmem:[%s4225_s26 + $0x118] sm:$0xff] }
 0x416   : > { %v3989_v38 = vpop.eup %3988 }
 0x417   : > { %1006 = vst.msk [vmem:[%s4469_s16] sm:$0x1] %vm4465_vm4, %v3989_v38  ;;  %v1318_v38 = vsel %vm660_vm0, %v1309_v32, 0 }
 0x427   : > { %v3538_v39 = vpop.f32.mrb[12].mxu1 }
 0x428   : > { %v1090_v42 = vpop.f32.mrb[13].mxu1 }
 0x429   : > { %v3539_v43 = vpop.f32.mrb[14].mxu1 }
 0x42a   : > { %v1122_v44 = vpack.c.bf16 %v3539_v43, %v3538_v39  ;;  %v1093_v45 = vpop.f32.mrb[15].mxu1  ;;  %v1310_v39 = vpack.c.bf16 %v3133_v37, %v3132_v36  ;;  %v3135_v43 = vld [vmem:[%s4225_s26 + $0x128] sm:$0xff] }
 0x42b   : > { %v1121_v46 = vpack.c.bf16 %v1093_v45, %v1090_v42  ;;  %v3134_v42 = vld [vmem:[%s4225_s26 + $0x120] sm:$0xff] }
 0x42c   : > { %v1126_v47 = vadd.bf16 %v4341_v12, %v1122_v44  ;;  %v1321_v44 = vsel %vm660_vm0, %v1310_v39, 0  ;;  %v1311_v45 = vpack.c.bf16 %v3135_v43, %v3134_v42 }
 0x42d   : > { %v1125_v58 = vadd.bf16 %v4343_v16, %v1121_v46  ;;  %v3136_v46 = vld [vmem:[%s4225_s26 + $0x130] sm:$0xff] }
 0x42e   : > { %v1130_v56 = vmax.bf16 %v4090_v2, %v1126_v47  ;;  %v3137_v47 = vld [vmem:[%s4225_s26 + $0x138] sm:$0xff] }
 0x42f   : > { %v3542_v48 = vpop.f32.mrb[16].mxu1  ;;  %v1129_v49 = vmax.bf16 %v4090_v2, %v1125_v58  ;;  %v1324_v58 = vsel %vm660_vm0, %v1311_v45, 0 }
 0x430   : > { %v1106_v50 = vpop.f32.mrb[17].mxu1 }
 0x431   : > { %v3543_v51 = vpop.f32.mrb[18].mxu1  ;;  %3544 = vmatprep.subr.bf16.mxu0 %v1129_v49 }
 0x432   : > { %v1124_v57 = vpack.c.bf16 %v3543_v51, %v3542_v48  ;;  %v1109_v59 = vpop.f32.mrb[19].mxu1  ;;  %3545 = vmatpush3.bf16.msra.mxu0 %v1129_v49  ;;  %v1312_v48 = vpack.c.bf16 %v3137_v47, %v3136_v46  ;;  %v3138_v49 = vld [vmem:[%s4225_s26 + $0x140] sm:$0xff] }
 0x433   : > { %v1123_v61 = vpack.c.bf16 %v1109_v59, %v1106_v50  ;;  %3546 = vmatprep.subr.bf16.mxu0 %v1130_v56  ;;  %v3139_v50 = vld [vmem:[%s4225_s26 + $0x148] sm:$0xff]  ;;  %v3141_v59 = vld [vmem:[%s4225_s26 + $0x158] sm:$0xff] }
 0x434   : > { %v1128_v0 = vadd.bf16 %v4355_v34, %v1124_v57  ;;  %v1327_v51 = vsel %vm660_vm0, %v1312_v48, 0  ;;  %v3140_v57 = vld [vmem:[%s4225_s26 + $0x150] sm:$0xff] }
 0x435   : > { %v1127_v4 = vadd.bf16 %v4353_v33, %v1123_v61 }
 0x436   : > { %3547 = vmatpush3.bf16.msra.mxu0 %v1130_v56  ;;  %v1132_v6 = vmax.bf16 %v4090_v2, %v1128_v0  ;;  %v1313_v56 = vpack.c.bf16 %v3139_v50, %v3138_v49  ;;  %v1314_v0 = vpack.c.bf16 %v3141_v59, %v3140_v57 }
 0x437   : > { %v1131_v5 = vmax.bf16 %v4090_v2, %v1127_v4  ;;  %v3142_v4 = vld [vmem:[%s4225_s26 + $0x160] sm:$0xff] }
 0x438   : > { %v1330_v61 = vsel %vm660_vm0, %v1313_v56, 0 }
 0x439   : > { %3548 = vmatprep.subr.bf16.mxu0 %v1131_v5 }
 0x43a   : > { %3549 = vmatpush3.bf16.msra.mxu0 %v1131_v5  ;;  %v3143_v5 = vld [vmem:[%s4225_s26 + $0x168] sm:$0xff] }
 0x43b   : > { %3550 = vmatprep.subr.bf16.mxu0 %v1132_v6 }
 0x43e   : > { %3551 = vmatpush3.bf16.msra.mxu0 %v1132_v6  ;;  %v1333_v6 = vsel %vm660_vm0, %v1314_v0, 0 }
 0x43f   : > { %3556 = vmatprep.subr.bf16.mxu0 %v4092_v41 }
 0x441   : > { %3553 = vmatmul.mubr.msk.bf16.vlgmr.msra.gmra.mrb[8].mxu0 %vm808_vm1, %v4364_v40 }
 0x442   : > { %3560 = vmatprep.mubr.msk.bf16.mxu0 %vm4093_vm2, %v4092_v41 }
 0x514   : > { %v3554_v8 = vpop.f32.mrb[8].mxu0 }
 0x515   : > { %v1167_v10 = vpop.f32.mrb[9].mxu0 }
 0x516   : > { %v3555_v11 = vpop.f32.mrb[10].mxu0 }
 0x517   : > { %v1183_v13 = vpack.c.bf16 %v3555_v11, %v3554_v8  ;;  %v1170_v14 = vpop.f32.mrb[11].mxu0  ;;  %v1315_v8 = vpack.c.bf16 %v3143_v5, %v3142_v4  ;;  %v3145_v11 = vld [vmem:[%s4225_s26 + $0x178] sm:$0xff] }
 0x518   : > { %v1182_v15 = vpack.c.bf16 %v1170_v14, %v1167_v10  ;;  %v3144_v10 = vld [vmem:[%s4225_s26 + $0x170] sm:$0xff] }
 0x519   : > { %v1185_v19 = vadd.bf16 %v4377_v63, %v1183_v13  ;;  %v1336_v13 = vsel %vm660_vm0, %v1315_v8, 0  ;;  %v1316_v14 = vpack.c.bf16 %v3145_v11, %v3144_v10 }
 0x51a   : > { %v1184_v18 = vadd.bf16 %v4375_v60, %v1182_v15 }
 0x51b   : > { %v1187_v22 = vmax.bf16 %v4090_v2, %v1185_v19  ;;  %v1339_v15 = vsel %vm660_vm0, %v1316_v14, 0 }
 0x51c   : > { %v1186_v21 = vmax.bf16 %v4090_v2, %v1184_v18 }
 0x51e   : > { %3557 = vmatpush3.bf16.msra.mxu0 %v1186_v21 }
 0x51f   : > { %3558 = vmatprep.subr.bf16.mxu0 %v4092_v41 }
 0x522   : > { %3559 = vmatpush3.bf16.msra.mxu0 %v1187_v22 }
 0x523   : > { %3564 = vmatprep.subr.bf16.mxu0 %v4092_v41 }
 0x525   : > { %3561 = vmatmul.mubr.msk.bf16.vlgmr.msra.gmra.mrb[12].mxu0 %vm660_vm0, %v4387_v7 }
 0x526   : > { %3566 = vmatprep.mubr.msk.bf16.mxu0 %vm4093_vm2, %v4092_v41 }
 0x5f8   : > { %v1222_v23 = vpop.f32.mrb[12].mxu0 }
 0x5f9   : > { %v3562_v24 = vpop.f32.mrb[13].mxu0 }
 0x5fa   : > { %v1225_v3 = vpop.f32.mrb[14].mxu0 }
 0x5fb   : > { %v1229_v26 = vpack.c.bf16 %v1225_v3, %v1222_v23  ;;  %v3563_v27 = vpop.f32.mrb[15].mxu0 }
 0x5fd   : > { %v1230_v31 = vadd.bf16 %v4396_v17, %v1229_v26 }
 0x5ff   : > { %v1231_v35 = vmax.bf16 %v4090_v2, %v1230_v31 }
 0x601   : > { %3565 = vmatpush3.bf16.msra.mxu0 %v1231_v35 }
 0x602   : > { %3886 = vmatprep.subr.msk.bf16.mxu0 %vm660_vm0, %v1309_v32 }
 0x604   : > { %3567 = vmatmul.mubr.msk.bf16.vlgmr.msra.gmra.mrb[16].mxu0 %vm940_vm3, %v4405_v25 }
 0x605   : > { %3586 = vmatprep.mubr.msk.bf16.mxu0 %vm660_vm0, %v4209_v1 }
 0x60a   : > { %3571 = vmatpush3.bf16.xpose.msra.mxu0 %v1318_v38 }
 0x60b   : > { %3887 = vmatprep.subr.msk.bf16.mxu0 %vm660_vm0, %v1310_v39 }
 0x612   : > { %3573 = vmatpush3.bf16.xpose.msra.mxu0 %v1321_v44 }
 0x613   : > { %3888 = vmatprep.subr.msk.bf16.mxu0 %vm660_vm0, %v1311_v45 }
 0x61a   : > { %3575 = vmatpush3.bf16.xpose.msra.mxu0 %v1324_v58 }
 0x61b   : > { %3889 = vmatprep.subr.msk.bf16.mxu0 %vm660_vm0, %v1312_v48 }
 0x622   : > { %3577 = vmatpush3.bf16.xpose.msra.mxu0 %v1327_v51 }
 0x623   : > { %3890 = vmatprep.subr.msk.bf16.mxu0 %vm660_vm0, %v1313_v56 }
 0x62a   : > { %3579 = vmatpush3.bf16.xpose.msra.mxu0 %v1330_v61 }
 0x62b   : > { %3891 = vmatprep.subr.msk.bf16.mxu0 %vm660_vm0, %v1314_v0 }
 0x632   : > { %3581 = vmatpush3.bf16.xpose.msra.mxu0 %v1333_v6 }
 0x633   : > { %3892 = vmatprep.subr.msk.bf16.mxu0 %vm660_vm0, %v1315_v8 }
 0x63a   : > { %3583 = vmatpush3.bf16.xpose.msra.mxu0 %v1336_v13 }
 0x63b   : > { %3893 = vmatprep.subr.msk.bf16.mxu0 %vm660_vm0, %v1316_v14 }
 0x642   : > { %3585 = vmatpush3.bf16.xpose.msra.mxu0 %v1339_v15 }
 0x649   : > { %3587 = vmatmul.mubr.msk.bf16.vlgmr.msra.gmra.mrb[20].mxu0 %vm660_vm0, %v4304_v52 }
 0x64a   : > { %3590 = vmatprep.mubr.msk.bf16.mxu0 %vm660_vm0, %v4309_v53 }
 0x651   : > { %3591 = vmatmul.mubr.msk.bf16.gmra.mrb[24].mxu0 %vm660_vm0, %v4318_v54 }
 0x652   : > { %3652 = vmatprep.mubr.msk.bf16.mxu0 %vm808_vm1, %v4325_v55 }
 0x6d7   : > { %v1266_v18 = vpop.f32.mrb[16].mxu0 }
 0x6d8   : > { %v1272_v19 = vpack.c.bf16 %v1266_v18, %v1266_v18  ;;  %v3568_v21 = vpop.f32.mrb[17].mxu0 }
 0x6d9   : > { %v1269_v22 = vpop.f32.mrb[18].mxu0 }
 0x6da   : > { %v1273_v23 = vadd.bf16 %v1272_v19, %v4450_v9  ;;  %v3569_v24 = vpop.f32.mrb[19].mxu0 }
 0x6dc   : > { %v1274_v3 = vmax.bf16 %v4090_v2, %v1273_v23 }
 0x6de   : > { %v1275_v26 = vunpack.c.l.bf16 %v1274_v3 }
 0x6e0   : > { %v1276_v27 = vmul.f32 %v1275_v26, %v4454_v20 }
 0x6e2   : > { %v1277_v28 = vrot.slane %v1276_v27, 4 }
 0x6e4   : > { %v1278_v30 = vadd.f32 %v1277_v28, %v1276_v27 }
 0x6e6   : > { %v1279_v31 = vrot.slane %v1278_v30, 2 }
 0x6e8   : > { %v1280_v32 = vadd.f32 %v1279_v31, %v1278_v30 }
 0x6ea   : > { %v1281_v35 = vrot.slane %v1280_v32, 1 }
 0x6ec   : > { %v1282_v36 = vadd.f32 %v1281_v35, %v1280_v32  ;;  %v3155_v35 = vld [vmem:[%s4225_s26 + $0x180] sm:$0xff] }
 0x6ee   : > { %v1283_v37 = vadd.f32 %v1282_v36, %v4458_v29  ;;  %v3156_v36 = vld [vmem:[%s4225_s26 + $0x188] sm:$0xff] }
 0x6f0   : > { %v1284_v38 = vsub.f32 0.0, %v1283_v37 }
 0x6f2   : > { %v1285_v39 = vmul.f32 1.442695, %v1284_v38  ;;  %v1594_v38 = vpack.c.bf16 %v3156_v36, %v3155_v35 }
 0x6f4   : > { %3990 = vpow2.f32 %v1285_v39 }
 0x6fe   : > { %v3991_v42 = vpop.eup %3990 }
 0x6ff   : > { %v1287_v43 = vadd.f32 1.0, %v3991_v42  ;;  %v3157_v42 = vld [vmem:[%s4225_s26 + $0x190] sm:$0xff] }
 0x701   : > { %3992 = vrcp.f32 %v1287_v43  ;;  %v3158_v43 = vld [vmem:[%s4225_s26 + $0x198] sm:$0xff] }
 0x70b   : > { %v3993_v44 = vpop.eup %3992 }
 0x70c   : > { %3129 = vst.msk [vmem:[%s4469_s16 + $0x1] sm:$0x1] %vm4465_vm4, %v3993_v44  ;;  %v1603_v44 = vsel %vm660_vm0, %v1594_v38, 0 }
 0x71c   : > { %v3588_v45 = vpop.f32.mrb[20].mxu0 }
 0x71d   : > { %v1375_v46 = vpop.f32.mrb[21].mxu0 }
 0x71e   : > { %v3589_v47 = vpop.f32.mrb[22].mxu0 }
 0x71f   : > { %v1407_v58 = vpack.c.bf16 %v3589_v47, %v3588_v45  ;;  %v1378_v48 = vpop.f32.mrb[23].mxu0  ;;  %v1595_v45 = vpack.c.bf16 %v3158_v43, %v3157_v42  ;;  %v3160_v47 = vld [vmem:[%s4225_s26 + $0x1a8] sm:$0xff] }
 0x720   : > { %v1406_v49 = vpack.c.bf16 %v1378_v48, %v1375_v46  ;;  %v3159_v46 = vld [vmem:[%s4225_s26 + $0x1a0] sm:$0xff] }
 0x721   : > { %v1411_v50 = vadd.bf16 %v4341_v12, %v1407_v58  ;;  %v1606_v58 = vsel %vm660_vm0, %v1595_v45, 0  ;;  %v1596_v48 = vpack.c.bf16 %v3160_v47, %v3159_v46 }
 0x722   : > { %v1410_v51 = vadd.bf16 %v4343_v16, %v1406_v49  ;;  %v3161_v49 = vld [vmem:[%s4225_s26 + $0x1b0] sm:$0xff] }
 0x723   : > { %v1415_v0 = vmax.bf16 %v4090_v2, %v1411_v50  ;;  %v1609_v50 = vsel %vm660_vm0, %v1596_v48, 0 }
 0x724   : > { %v3592_v56 = vpop.f32.mrb[24].mxu0  ;;  %v1414_v57 = vmax.bf16 %v4090_v2, %v1410_v51 }
 0x725   : > { %v1391_v59 = vpop.f32.mrb[25].mxu0 }
 0x726   : > { %v3593_v61 = vpop.f32.mrb[26].mxu0  ;;  %3594 = vmatprep.subr.bf16.mxu1 %v1414_v57 }
 0x727   : > { %v1409_v4 = vpack.c.bf16 %v3593_v61, %v3592_v56  ;;  %v1394_v5 = vpop.f32.mrb[27].mxu0  ;;  %3595 = vmatpush3.bf16.msra.mxu1 %v1414_v57  ;;  %v3163_v56 = vld [vmem:[%s4225_s26 + $0x1c0] sm:$0xff]  ;;  %v3164_v57 = vld [vmem:[%s4225_s26 + $0x1c8] sm:$0xff] }
 0x728   : > { %v1408_v6 = vpack.c.bf16 %v1394_v5, %v1391_v59  ;;  %3596 = vmatprep.subr.bf16.mxu1 %v1415_v0  ;;  %v1598_v61 = vpack.c.bf16 %v3164_v57, %v3163_v56 }
 0x729   : > { %v1413_v8 = vadd.bf16 %v4355_v34, %v1409_v4  ;;  %v3166_v4 = vld [vmem:[%s4225_s26 + $0x1d8] sm:$0xff] }
 0x72a   : > { %v1412_v10 = vadd.bf16 %v4353_v33, %v1408_v6  ;;  %v1615_v5 = vsel %vm660_vm0, %v1598_v61, 0 }
 0x72b   : > { %3597 = vmatpush3.bf16.msra.mxu1 %v1415_v0  ;;  %v1417_v13 = vmax.bf16 %v4090_v2, %v1413_v8  ;;  %v3165_v0 = vld [vmem:[%s4225_s26 + $0x1d0] sm:$0xff]  ;;  %v3167_v8 = vld [vmem:[%s4225_s26 + $0x1e0] sm:$0xff] }
 0x72c   : > { %v1416_v11 = vmax.bf16 %v4090_v2, %v1412_v10  ;;  %v1599_v6 = vpack.c.bf16 %v3166_v4, %v3165_v0  ;;  %v3168_v10 = vld [vmem:[%s4225_s26 + $0x1e8] sm:$0xff] }
 0x72e   : > { %3598 = vmatprep.subr.bf16.mxu1 %v1416_v11 }
 0x72f   : > { %3599 = vmatpush3.bf16.msra.mxu1 %v1416_v11  ;;  %v1618_v11 = vsel %vm660_vm0, %v1599_v6, 0 }
 0x730   : > { %3600 = vmatprep.subr.bf16.mxu1 %v1417_v13 }
 0x733   : > { %3601 = vmatpush3.bf16.msra.mxu1 %v1417_v13  ;;  %v1600_v13 = vpack.c.bf16 %v3168_v10, %v3167_v8 }
 0x734   : > { %3606 = vmatprep.subr.bf16.mxu1 %v4092_v41 }
 0x736   : > { %3603 = vmatmul.mubr.msk.bf16.vlgmr.msra.gmra.mrb[20].mxu1 %vm808_vm1, %v4364_v40 }
 0x737   : > { %3610 = vmatprep.mubr.msk.bf16.mxu1 %vm4093_vm2, %v4092_v41 }
 0x809   : > { %v3604_v14 = vpop.f32.mrb[20].mxu1 }
 0x80a   : > { %v1452_v15 = vpop.f32.mrb[21].mxu1 }
 0x80b   : > { %v3605_v18 = vpop.f32.mrb[22].mxu1 }
 0x80c   : > { %v1468_v19 = vpack.c.bf16 %v3605_v18, %v3604_v14  ;;  %v1455_v21 = vpop.f32.mrb[23].mxu1  ;;  %v3169_v14 = vld [vmem:[%s4225_s26 + $0x1f0] sm:$0xff]  ;;  %v1621_v18 = vsel %vm660_vm0, %v1600_v13, 0 }
 0x80d   : > { %v1467_v22 = vpack.c.bf16 %v1455_v21, %v1452_v15  ;;  %v3170_v15 = vld [vmem:[%s4225_s26 + $0x1f8] sm:$0xff] }
 0x80e   : > { %v1470_v24 = vadd.bf16 %v4377_v63, %v1468_v19  ;;  %v1601_v19 = vpack.c.bf16 %v3170_v15, %v3169_v14 }
 0x80f   : > { %v1469_v23 = vadd.bf16 %v4375_v60, %v1467_v22 }
 0x810   : > { %v1472_v26 = vmax.bf16 %v4090_v2, %v1470_v24  ;;  %v1624_v21 = vsel %vm660_vm0, %v1601_v19, 0 }
 0x811   : > { %v1471_v3 = vmax.bf16 %v4090_v2, %v1469_v23 }
 0x813   : > { %3607 = vmatpush3.bf16.msra.mxu1 %v1471_v3 }
 0x814   : > { %3608 = vmatprep.subr.bf16.mxu1 %v4092_v41 }
 0x817   : > { %3609 = vmatpush3.bf16.msra.mxu1 %v1472_v26 }
 0x818   : > { %3614 = vmatprep.subr.bf16.mxu1 %v4092_v41 }
 0x81a   : > { %3611 = vmatmul.mubr.msk.bf16.vlgmr.msra.gmra.mrb[24].mxu1 %vm660_vm0, %v4387_v7 }
 0x81b   : > { %3616 = vmatprep.mubr.msk.bf16.mxu1 %vm4093_vm2, %v4092_v41 }
 0x8ed   : > { %v1507_v27 = vpop.f32.mrb[24].mxu1 }
 0x8ee   : > { %v3612_v28 = vpop.f32.mrb[25].mxu1 }
 0x8ef   : > { %v1510_v30 = vpop.f32.mrb[26].mxu1 }
 0x8f0   : > { %v1514_v31 = vpack.c.bf16 %v1510_v30, %v1507_v27  ;;  %v3613_v32 = vpop.f32.mrb[27].mxu1 }
 0x8f2   : > { %v1515_v37 = vadd.bf16 %v4396_v17, %v1514_v31 }
 0x8f4   : > { %v1516_v39 = vmax.bf16 %v4090_v2, %v1515_v37 }
 0x8f6   : > { %3615 = vmatpush3.bf16.msra.mxu1 %v1516_v39 }
 0x8f7   : > { %3894 = vmatprep.subr.msk.bf16.mxu1 %vm660_vm0, %v1594_v38 }
 0x8f9   : > { %3617 = vmatmul.mubr.msk.bf16.vlgmr.msra.gmra.mrb[28].mxu1 %vm940_vm3, %v4405_v25 }
 0x8fa   : > { %3636 = vmatprep.mubr.msk.bf16.mxu1 %vm660_vm0, %v4209_v1  ;;  %v3162_v1 = vld [vmem:[%s4225_s26 + $0x1b8] sm:$0xff] }
 0x8fb   : > { %v1597_v51 = vpack.c.bf16 %v3162_v1, %v3161_v49 }
 0x8fd   : > { %v1612_v59 = vsel %vm660_vm0, %v1597_v51, 0 }
 0x8ff   : > { %3621 = vmatpush3.bf16.xpose.msra.mxu1 %v1603_v44 }
 0x900   : > { %3895 = vmatprep.subr.msk.bf16.mxu1 %vm660_vm0, %v1595_v45 }
 0x907   : > { %3623 = vmatpush3.bf16.xpose.msra.mxu1 %v1606_v58 }
 0x908   : > { %3896 = vmatprep.subr.msk.bf16.mxu1 %vm660_vm0, %v1596_v48 }
 0x90f   : > { %3625 = vmatpush3.bf16.xpose.msra.mxu1 %v1609_v50 }
 0x910   : > { %3897 = vmatprep.subr.msk.bf16.mxu1 %vm660_vm0, %v1597_v51 }
 0x917   : > { %3627 = vmatpush3.bf16.xpose.msra.mxu1 %v1612_v59 }
 0x918   : > { %3898 = vmatprep.subr.msk.bf16.mxu1 %vm660_vm0, %v1598_v61 }
 0x91f   : > { %3629 = vmatpush3.bf16.xpose.msra.mxu1 %v1615_v5 }
 0x920   : > { %3899 = vmatprep.subr.msk.bf16.mxu1 %vm660_vm0, %v1599_v6 }
 0x927   : > { %3631 = vmatpush3.bf16.xpose.msra.mxu1 %v1618_v11 }
 0x928   : > { %3900 = vmatprep.subr.msk.bf16.mxu1 %vm660_vm0, %v1600_v13 }
 0x92f   : > { %3633 = vmatpush3.bf16.xpose.msra.mxu1 %v1621_v18 }
 0x930   : > { %3901 = vmatprep.subr.msk.bf16.mxu1 %vm660_vm0, %v1601_v19 }
 0x937   : > { %3635 = vmatpush3.bf16.xpose.msra.mxu1 %v1624_v21 }
 0x93e   : > { %3637 = vmatmul.mubr.msk.bf16.vlgmr.msra.gmra.mrb[32].mxu1 %vm660_vm0, %v4304_v52 }
 0x93f   : > { %3640 = vmatprep.mubr.msk.bf16.mxu1 %vm660_vm0, %v4309_v53 }
 0x946   : > { %3641 = vmatmul.mubr.msk.bf16.gmra.mrb[36].mxu1 %vm660_vm0, %v4318_v54 }
 0x947   : > { %3702 = vmatprep.mubr.msk.bf16.mxu1 %vm808_vm1, %v4325_v55 }
 0x9cc   : > { %v1551_v22 = vpop.f32.mrb[28].mxu1 }
 0x9cd   : > { %v1557_v23 = vpack.c.bf16 %v1551_v22, %v1551_v22  ;;  %v3618_v24 = vpop.f32.mrb[29].mxu1 }
 0x9ce   : > { %v1554_v3 = vpop.f32.mrb[30].mxu1 }
 0x9cf   : > { %v1558_v26 = vadd.bf16 %v1557_v23, %v4450_v9  ;;  %v3619_v27 = vpop.f32.mrb[31].mxu1 }
 0x9d1   : > { %v1559_v28 = vmax.bf16 %v4090_v2, %v1558_v26 }
 0x9d3   : > { %v1560_v30 = vunpack.c.l.bf16 %v1559_v28 }
 0x9d5   : > { %v1561_v52 = vmul.f32 %v1560_v30, %v4454_v20  ;;  %v3180_v30 = vld [vmem:[%s4225_s26 + $0x200] sm:$0xff] }
 0x9d7   : > { %v1562_v53 = vrot.slane %v1561_v52, 4 }
 0x9d9   : > { %v1563_v31 = vadd.f32 %v1562_v53, %v1561_v52  ;;  %v3181_v52 = vld [vmem:[%s4225_s26 + $0x208] sm:$0xff] }
 0x9db   : > { %v1564_v32 = vrot.slane %v1563_v31, 2 }
 0x9dd   : > { %v1565_v54 = vadd.f32 %v1564_v32, %v1563_v31  ;;  %v1879_v31 = vpack.c.bf16 %v3181_v52, %v3180_v30 }
 0x9df   : > { %v1566_v35 = vrot.slane %v1565_v54, 1 }
 0x9e1   : > { %v1567_v36 = vadd.f32 %v1566_v35, %v1565_v54  ;;  %v3183_v54 = vld [vmem:[%s4225_s26 + $0x218] sm:$0xff]  ;;  %v4661_v35 = vld [vmem:[%s5052_s1] sm:$0xff]  }
 0x9e3   : > { %v1568_v55 = vadd.f32 %v1567_v36, %v4458_v29  ;;  %v1888_v36 = vsel %vm660_vm0, %v1879_v31, 0 }
 0x9e5   : > { %v1569_v37 = vsub.f32 0.0, %v1568_v55 }
 0x9e7   : > { %v1570_v38 = vmul.f32 1.442695, %v1569_v37  ;;  %v3185_v37 = vld [vmem:[%s4225_s26 + $0x228] sm:$0xff] }
 0x9e9   : > { %3994 = vpow2.f32 %v1570_v38 }
 0x9f3   : > { %v3995_v39 = vpop.eup %3994 }
 0x9f4   : > { %v1572_v42 = vadd.f32 1.0, %v3995_v39 }
 0x9f6   : > { %3996 = vrcp.f32 %v1572_v42  ;;  %v3186_v42 = vld [vmem:[%s4225_s26 + $0x230] sm:$0xff] }
 0xa00   : > { %v3997_v43 = vpop.eup %3996 }
 0xa01   : > { %3154 = vst.msk [vmem:[%s4469_s16 + $0x2] sm:$0x1] %vm4465_vm4, %v3997_v43  ;;  %v3187_v43 = vld [vmem:[%s4225_s26 + $0x238] sm:$0xff] }
 0xa11   : > { %v3638_v44 = vpop.f32.mrb[32].mxu1 }
 0xa12   : > { %v1660_v45 = vpop.f32.mrb[33].mxu1 }
 0xa13   : > { %v3639_v46 = vpop.f32.mrb[34].mxu1 }
 0xa14   : > { %v1692_v47 = vpack.c.bf16 %v3639_v46, %v3638_v44  ;;  %v1663_v58 = vpop.f32.mrb[35].mxu1  ;;  %v3188_v46 = vld [vmem:[%s4225_s26 + $0x240] sm:$0xff] }
 0xa15   : > { %v1691_v48 = vpack.c.bf16 %v1663_v58, %v1660_v45  ;;  %v1882_v45 = vpack.c.bf16 %v3187_v43, %v3186_v42 }
 0xa16   : > { %v1696_v49 = vadd.bf16 %v4341_v12, %v1692_v47  ;;  %v3189_v47 = vld [vmem:[%s4225_s26 + $0x248] sm:$0xff] }
 0xa17   : > { %v1695_v1 = vadd.bf16 %v4343_v16, %v1691_v48  ;;  %v1897_v58 = vsel %vm660_vm0, %v1882_v45, 0  ;;  %v1883_v48 = vpack.c.bf16 %v3189_v47, %v3188_v46 }
 0xa18   : > { %v1700_v59 = vmax.bf16 %v4090_v2, %v1696_v49  ;;  %v3190_v49 = vld [vmem:[%s4225_s26 + $0x250] sm:$0xff] }
 0xa19   : > { %v3642_v50 = vpop.f32.mrb[36].mxu1  ;;  %v1699_v51 = vmax.bf16 %v4090_v2, %v1695_v1  ;;  %v3191_v1 = vld [vmem:[%s4225_s26 + $0x258] sm:$0xff] }
 0xa1a   : > { %v1676_v56 = vpop.f32.mrb[37].mxu1 }
 0xa1b   : > { %v3643_v57 = vpop.f32.mrb[38].mxu1  ;;  %3644 = vmatprep.subr.bf16.mxu0 %v1699_v51 }
 0xa1c   : > { %v1694_v61 = vpack.c.bf16 %v3643_v57, %v3642_v50  ;;  %v1679_v0 = vpop.f32.mrb[39].mxu1  ;;  %3645 = vmatpush3.bf16.msra.mxu0 %v1699_v51  ;;  %v1900_v50 = vsel %vm660_vm0, %v1883_v48, 0  ;;  %v1884_v51 = vpack.c.bf16 %v3191_v1, %v3190_v49  ;;  %v3193_v57 = vld [vmem:[%s4225_s26 + $0x268] sm:$0xff] }
 0xa1d   : > { %v1693_v4 = vpack.c.bf16 %v1679_v0, %v1676_v56  ;;  %3646 = vmatprep.subr.bf16.mxu0 %v1700_v59  ;;  %v3192_v56 = vld [vmem:[%s4225_s26 + $0x260] sm:$0xff]  ;;  %v3194_v0 = vld [vmem:[%s4225_s26 + $0x270] sm:$0xff] }
 0xa1e   : > { %v1698_v5 = vadd.bf16 %v4355_v34, %v1694_v61  ;;  %v1885_v61 = vpack.c.bf16 %v3193_v57, %v3192_v56 }
 0xa1f   : > { %v1697_v6 = vadd.bf16 %v4353_v33, %v1693_v4  ;;  %v3195_v4 = vld [vmem:[%s4225_s26 + $0x278] sm:$0xff] }
 0xa20   : > { %3647 = vmatpush3.bf16.msra.mxu0 %v1700_v59  ;;  %v1702_v10 = vmax.bf16 %v4090_v2, %v1698_v5  ;;  %v1903_v59 = vsel %vm660_vm0, %v1884_v51, 0  ;;  %v1906_v5 = vsel %vm660_vm0, %v1885_v61, 0 }
 0xa21   : > { %v1701_v8 = vmax.bf16 %v4090_v2, %v1697_v6  ;;  %v1886_v6 = vpack.c.bf16 %v3195_v4, %v3194_v0  ;;  %v4739_v0 = vld [vmem:[%s5054_s3 + $0x8] sm:$0xff]  }
 0xa23   : > { %3648 = vmatprep.subr.bf16.mxu0 %v1701_v8 }
 0xa24   : > { %3649 = vmatpush3.bf16.msra.mxu0 %v1701_v8  ;;  %v1909_v8 = vsel %vm660_vm0, %v1886_v6, 0 }
 0xa25   : > { %3650 = vmatprep.subr.bf16.mxu0 %v1702_v10 }
 0xa28   : > { %3651 = vmatpush3.bf16.msra.mxu0 %v1702_v10  ;;  %v4695_v10 = vld [vmem:[%s5052_s1 + $0x8] sm:$0xff]  }
 0xa29   : > { %3656 = vmatprep.subr.bf16.mxu0 %v4092_v41 }
 0xa2b   : > { %3653 = vmatmul.mubr.msk.bf16.vlgmr.msra.gmra.mrb[28].mxu0 %vm808_vm1, %v4364_v40 }
 0xa2c   : > { %3660 = vmatprep.mubr.msk.bf16.mxu0 %vm4093_vm2, %v4092_v41 }
 0xafe   : > { %v3654_v11 = vpop.f32.mrb[28].mxu0 }
 0xaff   : > { %v1737_v13 = vpop.f32.mrb[29].mxu0 }
 0xb00   : > { %v3655_v14 = vpop.f32.mrb[30].mxu0 }
 0xb01   : > { %v1753_v15 = vpack.c.bf16 %v3655_v14, %v3654_v11  ;;  %v1740_v18 = vpop.f32.mrb[31].mxu0  ;;  %v4702_v11 = vld [vmem:[%s5052_s1 + $0x10] sm:$0xff]   ;;  %v4716_v14 = vld [vmem:[%s5054_s3] sm:$0xff]  }
 0xb02   : > { %v1752_v19 = vpack.c.bf16 %v1740_v18, %v1737_v13  ;;  %v4709_v13 = vld [vmem:[%s5052_s1 + $0x18] sm:$0xff]  }
 0xb03   : > { %v1755_v22 = vadd.bf16 %v4377_v63, %v1753_v15 }
 0xb04   : > { %v1754_v21 = vadd.bf16 %v4375_v60, %v1752_v19 }
 0xb05   : > { %v1757_v40 = vmax.bf16 %v4090_v2, %v1755_v22 }
 0xb06   : > { %v1756_v23 = vmax.bf16 %v4090_v2, %v1754_v21 }
 0xb08   : > { %3657 = vmatpush3.bf16.msra.mxu0 %v1756_v23 }
 0xb09   : > { %3658 = vmatprep.subr.bf16.mxu0 %v4092_v41 }
 0xb0c   : > { %3659 = vmatpush3.bf16.msra.mxu0 %v1757_v40 }
 0xb0d   : > { %3664 = vmatprep.subr.bf16.mxu0 %v4092_v41 }
 0xb0f   : > { %3661 = vmatmul.mubr.msk.bf16.vlgmr.msra.gmra.mrb[32].mxu0 %vm660_vm0, %v4387_v7  ;;  %v3182_v7 = vld [vmem:[%s4225_s26 + $0x210] sm:$0xff] }
 0xb10   : > { %3666 = vmatprep.mubr.msk.bf16.mxu0 %vm4093_vm2, %v4092_v41  ;;  %v1880_v55 = vpack.c.bf16 %v3183_v54, %v3182_v7 }
 0xb12   : > { %v1891_v38 = vsel %vm660_vm0, %v1880_v55, 0 }
 0xbe2   : > { %v1792_v24 = vpop.f32.mrb[32].mxu0 }
 0xbe3   : > { %v3662_v3 = vpop.f32.mrb[33].mxu0 }
 0xbe4   : > { %v1795_v26 = vpop.f32.mrb[34].mxu0 }
 0xbe5   : > { %v1799_v27 = vpack.c.bf16 %v1795_v26, %v1792_v24  ;;  %v3663_v28 = vpop.f32.mrb[35].mxu0 }
 0xbe7   : > { %v1800_v53 = vadd.bf16 %v4396_v17, %v1799_v27 }
 0xbe9   : > { %v1801_v32 = vmax.bf16 %v4090_v2, %v1800_v53 }
 0xbeb   : > { %3665 = vmatpush3.bf16.msra.mxu0 %v1801_v32 }
 0xbec   : > { %3902 = vmatprep.subr.msk.bf16.mxu0 %vm660_vm0, %v1879_v31 }
 0xbee   : > { %3667 = vmatmul.mubr.msk.bf16.vlgmr.msra.gmra.mrb[36].mxu0 %vm940_vm3, %v4405_v25  ;;  %v3184_v25 = vld [vmem:[%s4225_s26 + $0x220] sm:$0xff] }
 0xbef   : > { %3686 = vmatprep.mubr.msk.bf16.mxu0 %vm660_vm0, %v4661_v35  ;;  %v1881_v39 = vpack.c.bf16 %v3185_v37, %v3184_v25 }
 0xbf1   : > { %v1894_v44 = vsel %vm660_vm0, %v1881_v39, 0 }
 0xbf4   : > { %3671 = vmatpush3.bf16.xpose.msra.mxu0 %v1888_v36 }
 0xbf5   : > { %3903 = vmatprep.subr.msk.bf16.mxu0 %vm660_vm0, %v1880_v55 }
 0xbfc   : > { %3673 = vmatpush3.bf16.xpose.msra.mxu0 %v1891_v38 }
 0xbfd   : > { %3904 = vmatprep.subr.msk.bf16.mxu0 %vm660_vm0, %v1881_v39 }
 0xc04   : > { %3675 = vmatpush3.bf16.xpose.msra.mxu0 %v1894_v44 }
 0xc05   : > { %3905 = vmatprep.subr.msk.bf16.mxu0 %vm660_vm0, %v1882_v45 }
 0xc0c   : > { %3677 = vmatpush3.bf16.xpose.msra.mxu0 %v1897_v58 }
 0xc0d   : > { %3906 = vmatprep.subr.msk.bf16.mxu0 %vm660_vm0, %v1883_v48 }
 0xc14   : > { %3679 = vmatpush3.bf16.xpose.msra.mxu0 %v1900_v50 }
 0xc15   : > { %3907 = vmatprep.subr.msk.bf16.mxu0 %vm660_vm0, %v1884_v51 }
 0xc1c   : > { %3681 = vmatpush3.bf16.xpose.msra.mxu0 %v1903_v59 }
 0xc1d   : > { %3908 = vmatprep.subr.msk.bf16.mxu0 %vm660_vm0, %v1885_v61 }
 0xc24   : > { %3683 = vmatpush3.bf16.xpose.msra.mxu0 %v1906_v5 }
 0xc25   : > { %3909 = vmatprep.subr.msk.bf16.mxu0 %vm660_vm0, %v1886_v6 }
 0xc2c   : > { %3685 = vmatpush3.bf16.xpose.msra.mxu0 %v1909_v8 }
 0xc33   : > { %3687 = vmatmul.mubr.msk.bf16.vlgmr.msra.gmra.mrb[40].mxu0 %vm660_vm0, %v4695_v10 }
 0xc34   : > { %3690 = vmatprep.mubr.msk.bf16.mxu0 %vm660_vm0, %v4702_v11 }
 0xc3b   : > { %3691 = vmatmul.mubr.msk.bf16.gmra.mrb[44].mxu0 %vm660_vm0, %v4709_v13 }
 0xc3c   : > { %3752 = vmatprep.mubr.msk.bf16.mxu0 %vm808_vm1, %v4716_v14 }
 0xcc1   : > { %v1836_v15 = vpop.f32.mrb[36].mxu0 }
 0xcc2   : > { %v1842_v18 = vpack.c.bf16 %v1836_v15, %v1836_v15  ;;  %v3668_v19 = vpop.f32.mrb[37].mxu0 }
 0xcc3   : > { %v1839_v21 = vpop.f32.mrb[38].mxu0 }
 0xcc4   : > { %v1843_v22 = vadd.bf16 %v1842_v18, %v4450_v9  ;;  %v3669_v23 = vpop.f32.mrb[39].mxu0 }
 0xcc6   : > { %v1844_v40 = vmax.bf16 %v4090_v2, %v1843_v22 }
 0xcc8   : > { %v1845_v24 = vunpack.c.l.bf16 %v1844_v40  ;;  %v4754_v40 = vld [vmem:[%s5056_s5] sm:$0xff]  }
 0xcca   : > { %v1846_v3 = vmul.f32 %v1845_v24, %v4454_v20 }
 0xccc   : > { %v1847_v26 = vrot.slane %v1846_v3, 4 }
 0xcce   : > { %v1848_v27 = vadd.f32 %v1847_v26, %v1846_v3 }
 0xcd0   : > { %v1849_v28 = vrot.slane %v1848_v27, 2 }
 0xcd2   : > { %v1850_v30 = vadd.f32 %v1849_v28, %v1848_v27 }
 0xcd4   : > { %v1851_v52 = vrot.slane %v1850_v30, 1 }
 0xcd6   : > { %v1852_v53 = vadd.f32 %v1851_v52, %v1850_v30  ;;  %v3205_v30 = vld [vmem:[%s4225_s26 + $0x280] sm:$0xff]  ;;  %v3206_v52 = vld [vmem:[%s4225_s26 + $0x288] sm:$0xff] }
 0xcd8   : > { %v1853_v31 = vadd.f32 %v1852_v53, %v4458_v29 }
 0xcda   : > { %v1854_v32 = vsub.f32 0.0, %v1853_v31  ;;  %v2164_v31 = vpack.c.bf16 %v3206_v52, %v3205_v30 }
 0xcdc   : > { %v1855_v7 = vmul.f32 1.442695, %v1854_v32 }
 0xcde   : > { %3998 = vpow2.f32 %v1855_v7  ;;  %v4768_v7 = vld [vmem:[%s5058_s7] sm:$0xf] }
 0xce8   : > { %v3999_v54 = vpop.eup %3998 }
 0xce9   : > { %v1857_v36 = vadd.f32 1.0, %v3999_v54  ;;  %v3207_v54 = vld [vmem:[%s4225_s26 + $0x290] sm:$0xff] }
 0xceb   : > { %4000 = vrcp.f32 %v1857_v36  ;;  %v3208_v36 = vld [vmem:[%s4225_s26 + $0x298] sm:$0xff] }
 0xcf5   : > { %v4001_v55 = vpop.eup %4000 }
 0xcf6   : > { %3179 = vst.msk [vmem:[%s4469_s16 + $0x3] sm:$0x1] %vm4465_vm4, %v4001_v55  ;;  %v2173_v55 = vsel %vm660_vm0, %v2164_v31, 0 }
 0xd06   : > { %v3688_v25 = vpop.f32.mrb[40].mxu0 }
 0xd07   : > { %v1945_v37 = vpop.f32.mrb[41].mxu0 }
 0xd08   : > { %v3689_v38 = vpop.f32.mrb[42].mxu0 }
 0xd09   : > { %v1977_v39 = vpack.c.bf16 %v3689_v38, %v3688_v25  ;;  %v1948_v42 = vpop.f32.mrb[43].mxu0  ;;  %v2165_v25 = vpack.c.bf16 %v3208_v36, %v3207_v54  ;;  %v3210_v38 = vld [vmem:[%s4225_s26 + $0x2a8] sm:$0xff] }
 0xd0a   : > { %v1976_v43 = vpack.c.bf16 %v1948_v42, %v1945_v37  ;;  %v3209_v37 = vld [vmem:[%s4225_s26 + $0x2a0] sm:$0xff] }
 0xd0b   : > { %v1981_v44 = vadd.bf16 %v4341_v12, %v1977_v39  ;;  %v2176_v39 = vsel %vm660_vm0, %v2165_v25, 0  ;;  %v2166_v42 = vpack.c.bf16 %v3210_v38, %v3209_v37 }
 0xd0c   : > { %v1980_v45 = vadd.bf16 %v4343_v16, %v1976_v43  ;;  %v3211_v43 = vld [vmem:[%s4225_s26 + $0x2b0] sm:$0xff] }
 0xd0d   : > { %v1985_v49 = vmax.bf16 %v4090_v2, %v1981_v44  ;;  %v3212_v44 = vld [vmem:[%s4225_s26 + $0x2b8] sm:$0xff] }
 0xd0e   : > { %v3692_v46 = vpop.f32.mrb[44].mxu0  ;;  %v1984_v47 = vmax.bf16 %v4090_v2, %v1980_v45  ;;  %v2179_v45 = vsel %vm660_vm0, %v2166_v42, 0 }
 0xd0f   : > { %v1961_v58 = vpop.f32.mrb[45].mxu0 }
 0xd10   : > { %v3693_v48 = vpop.f32.mrb[46].mxu0  ;;  %3694 = vmatprep.subr.bf16.mxu1 %v1984_v47 }
 0xd11   : > { %v1979_v1 = vpack.c.bf16 %v3693_v48, %v3692_v46  ;;  %v1964_v50 = vpop.f32.mrb[47].mxu0  ;;  %3695 = vmatpush3.bf16.msra.mxu1 %v1984_v47  ;;  %v2167_v46 = vpack.c.bf16 %v3212_v44, %v3211_v43  ;;  %v3213_v47 = vld [vmem:[%s4225_s26 + $0x2c0] sm:$0xff] }
 0xd12   : > { %v1978_v51 = vpack.c.bf16 %v1964_v50, %v1961_v58  ;;  %3696 = vmatprep.subr.bf16.mxu1 %v1985_v49  ;;  %v3214_v58 = vld [vmem:[%s4225_s26 + $0x2c8] sm:$0xff]  ;;  %v3216_v50 = vld [vmem:[%s4225_s26 + $0x2d8] sm:$0xff] }
 0xd13   : > { %v1983_v56 = vadd.bf16 %v4355_v34, %v1979_v1  ;;  %v2182_v48 = vsel %vm660_vm0, %v2167_v46, 0  ;;  %v3215_v1 = vld [vmem:[%s4225_s26 + $0x2d0] sm:$0xff] }
 0xd14   : > { %v1982_v57 = vadd.bf16 %v4353_v33, %v1978_v51 }
 0xd15   : > { %3697 = vmatpush3.bf16.msra.mxu1 %v1985_v49  ;;  %v1987_v61 = vmax.bf16 %v4090_v2, %v1983_v56  ;;  %v2168_v49 = vpack.c.bf16 %v3214_v58, %v3213_v47  ;;  %v2169_v56 = vpack.c.bf16 %v3216_v50, %v3215_v1 }
 0xd16   : > { %v1986_v59 = vmax.bf16 %v4090_v2, %v1982_v57  ;;  %v3217_v57 = vld [vmem:[%s4225_s26 + $0x2e0] sm:$0xff] }
 0xd17   : > { %v2185_v51 = vsel %vm660_vm0, %v2168_v49, 0 }
 0xd18   : > { %3698 = vmatprep.subr.bf16.mxu1 %v1986_v59 }
 0xd19   : > { %3699 = vmatpush3.bf16.msra.mxu1 %v1986_v59  ;;  %v3218_v59 = vld [vmem:[%s4225_s26 + $0x2e8] sm:$0xff] }
 0xd1a   : > { %3700 = vmatprep.subr.bf16.mxu1 %v1987_v61 }
 0xd1d   : > { %3701 = vmatpush3.bf16.msra.mxu1 %v1987_v61  ;;  %v2188_v61 = vsel %vm660_vm0, %v2169_v56, 0 }
 0xd1e   : > { %3706 = vmatprep.subr.bf16.mxu1 %v4092_v41 }
 0xd20   : > { %3703 = vmatmul.mubr.msk.bf16.vlgmr.msra.gmra.mrb[40].mxu1 %vm808_vm1, %v4739_v0 }
 0xd21   : > { %3710 = vmatprep.mubr.msk.bf16.mxu1 %vm4093_vm2, %v4092_v41 }
 0xdf3   : > { %v3704_v4 = vpop.f32.mrb[40].mxu1 }
 0xdf4   : > { %v2022_v5 = vpop.f32.mrb[41].mxu1 }
 0xdf5   : > { %v3705_v6 = vpop.f32.mrb[42].mxu1 }
 0xdf6   : > { %v2038_v8 = vpack.c.bf16 %v3705_v6, %v3704_v4  ;;  %v2025_v15 = vpop.f32.mrb[43].mxu1  ;;  %v2170_v4 = vpack.c.bf16 %v3218_v59, %v3217_v57  ;;  %v3220_v6 = vld [vmem:[%s4225_s26 + $0x2f8] sm:$0xff] }
 0xdf7   : > { %v2037_v18 = vpack.c.bf16 %v2025_v15, %v2022_v5  ;;  %v3219_v5 = vld [vmem:[%s4225_s26 + $0x2f0] sm:$0xff] }
 0xdf8   : > { %v2040_v21 = vadd.bf16 %v4377_v63, %v2038_v8  ;;  %v2191_v8 = vsel %vm660_vm0, %v2170_v4, 0  ;;  %v2171_v15 = vpack.c.bf16 %v3220_v6, %v3219_v5 }
 0xdf9   : > { %v2039_v19 = vadd.bf16 %v4375_v60, %v2037_v18 }
 0xdfa   : > { %v2042_v23 = vmax.bf16 %v4090_v2, %v2040_v21  ;;  %v2194_v18 = vsel %vm660_vm0, %v2171_v15, 0 }
 0xdfb   : > { %v2041_v22 = vmax.bf16 %v4090_v2, %v2039_v19 }
 0xdfd   : > { %3707 = vmatpush3.bf16.msra.mxu1 %v2041_v22 }
 0xdfe   : > { %3708 = vmatprep.subr.bf16.mxu1 %v4092_v41 }
 0xe01   : > { %3709 = vmatpush3.bf16.msra.mxu1 %v2042_v23 }
 0xe02   : > { %3714 = vmatprep.subr.bf16.mxu1 %v4092_v41 }
 0xe04   : > { %3711 = vmatmul.mubr.msk.bf16.vlgmr.msra.gmra.mrb[44].mxu1 %vm660_vm0, %v4754_v40 }
 0xe05   : > { %3716 = vmatprep.mubr.msk.bf16.mxu1 %vm4093_vm2, %v4092_v41 }
 0xed7   : > { %v2077_v24 = vpop.f32.mrb[44].mxu1 }
 0xed8   : > { %v3712_v3 = vpop.f32.mrb[45].mxu1 }
 0xed9   : > { %v2080_v26 = vpop.f32.mrb[46].mxu1 }
 0xeda   : > { %v2084_v27 = vpack.c.bf16 %v2080_v26, %v2077_v24  ;;  %v3713_v28 = vpop.f32.mrb[47].mxu1 }
 0xedc   : > { %v2085_v53 = vadd.bf16 %v4396_v17, %v2084_v27 }
 0xede   : > { %v2086_v32 = vmax.bf16 %v4090_v2, %v2085_v53 }
 0xee0   : > { %3715 = vmatpush3.bf16.msra.mxu1 %v2086_v32 }
 0xee1   : > { %3910 = vmatprep.subr.msk.bf16.mxu1 %vm660_vm0, %v2164_v31 }
 0xee3   : > { %3717 = vmatmul.mubr.msk.bf16.vlgmr.msra.gmra.mrb[48].mxu1 %vm940_vm3, %v4768_v7 }
 0xee4   : > { %3736 = vmatprep.mubr.msk.bf16.mxu1 %vm660_vm0, %v4661_v35 }
 0xee9   : > { %3721 = vmatpush3.bf16.xpose.msra.mxu1 %v2173_v55 }
 0xeea   : > { %3911 = vmatprep.subr.msk.bf16.mxu1 %vm660_vm0, %v2165_v25 }
 0xef1   : > { %3723 = vmatpush3.bf16.xpose.msra.mxu1 %v2176_v39 }
 0xef2   : > { %3912 = vmatprep.subr.msk.bf16.mxu1 %vm660_vm0, %v2166_v42 }
 0xef9   : > { %3725 = vmatpush3.bf16.xpose.msra.mxu1 %v2179_v45 }
 0xefa   : > { %3913 = vmatprep.subr.msk.bf16.mxu1 %vm660_vm0, %v2167_v46 }
 0xf01   : > { %3727 = vmatpush3.bf16.xpose.msra.mxu1 %v2182_v48 }
 0xf02   : > { %3914 = vmatprep.subr.msk.bf16.mxu1 %vm660_vm0, %v2168_v49 }
 0xf09   : > { %3729 = vmatpush3.bf16.xpose.msra.mxu1 %v2185_v51 }
 0xf0a   : > { %3915 = vmatprep.subr.msk.bf16.mxu1 %vm660_vm0, %v2169_v56 }
 0xf11   : > { %3731 = vmatpush3.bf16.xpose.msra.mxu1 %v2188_v61 }
 0xf12   : > { %3916 = vmatprep.subr.msk.bf16.mxu1 %vm660_vm0, %v2170_v4 }
 0xf19   : > { %3733 = vmatpush3.bf16.xpose.msra.mxu1 %v2191_v8 }
 0xf1a   : > { %3917 = vmatprep.subr.msk.bf16.mxu1 %vm660_vm0, %v2171_v15 }
 0xf21   : > { %3735 = vmatpush3.bf16.xpose.msra.mxu1 %v2194_v18 }
 0xf28   : > { %3737 = vmatmul.mubr.msk.bf16.vlgmr.msra.gmra.mrb[52].mxu1 %vm660_vm0, %v4695_v10 }
 0xf29   : > { %3740 = vmatprep.mubr.msk.bf16.mxu1 %vm660_vm0, %v4702_v11 }
 0xf30   : > { %3741 = vmatmul.mubr.msk.bf16.gmra.mrb[56].mxu1 %vm660_vm0, %v4709_v13 }
 0xf31   : > { %3802 = vmatprep.mubr.msk.bf16.mxu1 %vm808_vm1, %v4716_v14 }
 0xfb6   : > { %v2121_v19 = vpop.f32.mrb[48].mxu1 }
 0xfb7   : > { %v2127_v21 = vpack.c.bf16 %v2121_v19, %v2121_v19  ;;  %v3718_v22 = vpop.f32.mrb[49].mxu1 }
 0xfb8   : > { %v2124_v23 = vpop.f32.mrb[50].mxu1 }
 0xfb9   : > { %v2128_v24 = vadd.bf16 %v2127_v21, %v4450_v9  ;;  %v3719_v3 = vpop.f32.mrb[51].mxu1 }
 0xfbb   : > { %v2129_v26 = vmax.bf16 %v4090_v2, %v2128_v24 }
 0xfbd   : > { %v2130_v27 = vunpack.c.l.bf16 %v2129_v26 }
 0xfbf   : > { %v2131_v28 = vmul.f32 %v2130_v27, %v4454_v20 }
 0xfc1   : > { %v2132_v30 = vrot.slane %v2131_v28, 4 }
 0xfc3   : > { %v2133_v52 = vadd.f32 %v2132_v30, %v2131_v28 }
 0xfc5   : > { %v2134_v53 = vrot.slane %v2133_v52, 2 }
 0xfc7   : > { %v2135_v31 = vadd.f32 %v2134_v53, %v2133_v52 }
 0xfc9   : > { %v2136_v32 = vrot.slane %v2135_v31, 1 }
 0xfcb   : > { %v2137_v54 = vadd.f32 %v2136_v32, %v2135_v31  ;;  %v3230_v32 = vld [vmem:[%s4225_s26 + $0x300] sm:$0xff] }
 0xfcd   : > { %v2138_v36 = vadd.f32 %v2137_v54, %v4458_v29  ;;  %v3231_v54 = vld [vmem:[%s4225_s26 + $0x308] sm:$0xff] }
 0xfcf   : > { %v2139_v55 = vsub.f32 0.0, %v2138_v36 }
 0xfd1   : > { %v2140_v25 = vmul.f32 1.442695, %v2139_v55  ;;  %v2449_v55 = vpack.c.bf16 %v3231_v54, %v3230_v32 }
 0xfd3   : > { %4002 = vpow2.f32 %v2140_v25 }
 0xfdd   : > { %v4003_v37 = vpop.eup %4002 }
 0xfde   : > { %v2142_v38 = vadd.f32 1.0, %v4003_v37  ;;  %v3232_v37 = vld [vmem:[%s4225_s26 + $0x310] sm:$0xff] }
 0xfe0   : > { %4004 = vrcp.f32 %v2142_v38  ;;  %v3233_v38 = vld [vmem:[%s4225_s26 + $0x318] sm:$0xff] }
 0xfea   : > { %v4005_v39 = vpop.eup %4004 }
 0xfeb   : > { %3204 = vst.msk [vmem:[%s4469_s16 + $0x4] sm:$0x1] %vm4465_vm4, %v4005_v39  ;;  %v2458_v39 = vsel %vm660_vm0, %v2449_v55, 0 }
 0xffb   : > { %v3738_v42 = vpop.f32.mrb[52].mxu1 }
 0xffc   : > { %v2230_v43 = vpop.f32.mrb[53].mxu1 }
 0xffd   : > { %v3739_v44 = vpop.f32.mrb[54].mxu1 }
 0xffe   : > { %v2262_v45 = vpack.c.bf16 %v3739_v44, %v3738_v42  ;;  %v2233_v46 = vpop.f32.mrb[55].mxu1  ;;  %v2450_v42 = vpack.c.bf16 %v3233_v38, %v3232_v37  ;;  %v3235_v44 = vld [vmem:[%s4225_s26 + $0x328] sm:$0xff] }
 0xfff   : > { %v2261_v47 = vpack.c.bf16 %v2233_v46, %v2230_v43  ;;  %v3234_v43 = vld [vmem:[%s4225_s26 + $0x320] sm:$0xff] }
0x1000   : > { %v2266_v58 = vadd.bf16 %v4341_v12, %v2262_v45  ;;  %v2461_v45 = vsel %vm660_vm0, %v2450_v42, 0  ;;  %v2451_v46 = vpack.c.bf16 %v3235_v44, %v3234_v43 }
0x1001   : > { %v2265_v48 = vadd.bf16 %v4343_v16, %v2261_v47  ;;  %v3236_v47 = vld [vmem:[%s4225_s26 + $0x330] sm:$0xff] }
0x1002   : > { %v2270_v56 = vmax.bf16 %v4090_v2, %v2266_v58  ;;  %v3237_v58 = vld [vmem:[%s4225_s26 + $0x338] sm:$0xff] }
0x1003   : > { %v3742_v49 = vpop.f32.mrb[56].mxu1  ;;  %v2269_v1 = vmax.bf16 %v4090_v2, %v2265_v48  ;;  %v2464_v48 = vsel %vm660_vm0, %v2451_v46, 0 }
0x1004   : > { %v2246_v50 = vpop.f32.mrb[57].mxu1 }
0x1005   : > { %v3743_v51 = vpop.f32.mrb[58].mxu1  ;;  %3744 = vmatprep.subr.bf16.mxu0 %v2269_v1 }
0x1006   : > { %v2264_v57 = vpack.c.bf16 %v3743_v51, %v3742_v49  ;;  %v2249_v59 = vpop.f32.mrb[59].mxu1  ;;  %3745 = vmatpush3.bf16.msra.mxu0 %v2269_v1  ;;  %v2452_v49 = vpack.c.bf16 %v3237_v58, %v3236_v47  ;;  %v3238_v1 = vld [vmem:[%s4225_s26 + $0x340] sm:$0xff] }
0x1007   : > { %v2263_v61 = vpack.c.bf16 %v2249_v59, %v2246_v50  ;;  %3746 = vmatprep.subr.bf16.mxu0 %v2270_v56  ;;  %v3239_v50 = vld [vmem:[%s4225_s26 + $0x348] sm:$0xff]  ;;  %v3241_v59 = vld [vmem:[%s4225_s26 + $0x358] sm:$0xff] }
0x1008   : > { %v2268_v4 = vadd.bf16 %v4355_v34, %v2264_v57  ;;  %v2467_v51 = vsel %vm660_vm0, %v2452_v49, 0  ;;  %v3240_v57 = vld [vmem:[%s4225_s26 + $0x350] sm:$0xff] }
0x1009   : > { %v2267_v5 = vadd.bf16 %v4353_v33, %v2263_v61 }
0x100a   : > { %3747 = vmatpush3.bf16.msra.mxu0 %v2270_v56  ;;  %v2272_v8 = vmax.bf16 %v4090_v2, %v2268_v4  ;;  %v2453_v56 = vpack.c.bf16 %v3239_v50, %v3238_v1  ;;  %v2454_v4 = vpack.c.bf16 %v3241_v59, %v3240_v57 }
0x100b   : > { %v2271_v6 = vmax.bf16 %v4090_v2, %v2267_v5  ;;  %v3242_v5 = vld [vmem:[%s4225_s26 + $0x360] sm:$0xff] }
0x100c   : > { %v2470_v61 = vsel %vm660_vm0, %v2453_v56, 0 }
0x100d   : > { %3748 = vmatprep.subr.bf16.mxu0 %v2271_v6 }
0x100e   : > { %3749 = vmatpush3.bf16.msra.mxu0 %v2271_v6  ;;  %v3243_v6 = vld [vmem:[%s4225_s26 + $0x368] sm:$0xff] }
0x100f   : > { %3750 = vmatprep.subr.bf16.mxu0 %v2272_v8 }
0x1012   : > { %3751 = vmatpush3.bf16.msra.mxu0 %v2272_v8  ;;  %v2473_v8 = vsel %vm660_vm0, %v2454_v4, 0 }
0x1013   : > { %3756 = vmatprep.subr.bf16.mxu0 %v4092_v41 }
0x1015   : > { %3753 = vmatmul.mubr.msk.bf16.vlgmr.msra.gmra.mrb[48].mxu0 %vm808_vm1, %v4739_v0 }
0x1016   : > { %3760 = vmatprep.mubr.msk.bf16.mxu0 %vm4093_vm2, %v4092_v41 }
0x10e8   : > { %v3754_v15 = vpop.f32.mrb[48].mxu0 }
0x10e9   : > { %v2307_v18 = vpop.f32.mrb[49].mxu0 }
0x10ea   : > { %v3755_v19 = vpop.f32.mrb[50].mxu0 }
0x10eb   : > { %v2323_v21 = vpack.c.bf16 %v3755_v19, %v3754_v15  ;;  %v2310_v22 = vpop.f32.mrb[51].mxu0  ;;  %v2455_v15 = vpack.c.bf16 %v3243_v6, %v3242_v5  ;;  %v3245_v19 = vld [vmem:[%s4225_s26 + $0x378] sm:$0xff] }
0x10ec   : > { %v2322_v23 = vpack.c.bf16 %v2310_v22, %v2307_v18  ;;  %v3244_v18 = vld [vmem:[%s4225_s26 + $0x370] sm:$0xff] }
0x10ed   : > { %v2325_v3 = vadd.bf16 %v4377_v63, %v2323_v21  ;;  %v2476_v21 = vsel %vm660_vm0, %v2455_v15, 0  ;;  %v2456_v22 = vpack.c.bf16 %v3245_v19, %v3244_v18 }
0x10ee   : > { %v2324_v24 = vadd.bf16 %v4375_v60, %v2322_v23 }
0x10ef   : > { %v2327_v27 = vmax.bf16 %v4090_v2, %v2325_v3  ;;  %v2479_v23 = vsel %vm660_vm0, %v2456_v22, 0 }
0x10f0   : > { %v2326_v26 = vmax.bf16 %v4090_v2, %v2324_v24 }
0x10f2   : > { %3757 = vmatpush3.bf16.msra.mxu0 %v2326_v26 }
0x10f3   : > { %3758 = vmatprep.subr.bf16.mxu0 %v4092_v41 }
0x10f6   : > { %3759 = vmatpush3.bf16.msra.mxu0 %v2327_v27 }
0x10f7   : > { %3764 = vmatprep.subr.bf16.mxu0 %v4092_v41 }
0x10f9   : > { %3761 = vmatmul.mubr.msk.bf16.vlgmr.msra.gmra.mrb[52].mxu0 %vm660_vm0, %v4754_v40 }
0x10fa   : > { %3766 = vmatprep.mubr.msk.bf16.mxu0 %vm4093_vm2, %v4092_v41 }
0x11cc   : > { %v2362_v28 = vpop.f32.mrb[52].mxu0 }
0x11cd   : > { %v3762_v30 = vpop.f32.mrb[53].mxu0 }
0x11ce   : > { %v2365_v52 = vpop.f32.mrb[54].mxu0 }
0x11cf   : > { %v2369_v53 = vpack.c.bf16 %v2365_v52, %v2362_v28  ;;  %v3763_v31 = vpop.f32.mrb[55].mxu0 }
0x11d1   : > { %v2370_v36 = vadd.bf16 %v4396_v17, %v2369_v53 }
0x11d3   : > { %v2371_v25 = vmax.bf16 %v4090_v2, %v2370_v36 }
0x11d5   : > { %3765 = vmatpush3.bf16.msra.mxu0 %v2371_v25 }
0x11d6   : > { %3918 = vmatprep.subr.msk.bf16.mxu0 %vm660_vm0, %v2449_v55 }
0x11d8   : > { %3767 = vmatmul.mubr.msk.bf16.vlgmr.msra.gmra.mrb[56].mxu0 %vm940_vm3, %v4768_v7 }
0x11d9   : > { %3786 = vmatprep.mubr.msk.bf16.mxu0 %vm660_vm0, %v4661_v35 }
0x11de   : > { %3771 = vmatpush3.bf16.xpose.msra.mxu0 %v2458_v39 }
0x11df   : > { %3919 = vmatprep.subr.msk.bf16.mxu0 %vm660_vm0, %v2450_v42 }
0x11e6   : > { %3773 = vmatpush3.bf16.xpose.msra.mxu0 %v2461_v45 }
0x11e7   : > { %3920 = vmatprep.subr.msk.bf16.mxu0 %vm660_vm0, %v2451_v46 }
0x11ee   : > { %3775 = vmatpush3.bf16.xpose.msra.mxu0 %v2464_v48 }
0x11ef   : > { %3921 = vmatprep.subr.msk.bf16.mxu0 %vm660_vm0, %v2452_v49 }
0x11f6   : > { %3777 = vmatpush3.bf16.xpose.msra.mxu0 %v2467_v51 }
0x11f7   : > { %3922 = vmatprep.subr.msk.bf16.mxu0 %vm660_vm0, %v2453_v56 }
0x11fe   : > { %3779 = vmatpush3.bf16.xpose.msra.mxu0 %v2470_v61 }
0x11ff   : > { %3923 = vmatprep.subr.msk.bf16.mxu0 %vm660_vm0, %v2454_v4 }
0x1206   : > { %3781 = vmatpush3.bf16.xpose.msra.mxu0 %v2473_v8 }
0x1207   : > { %3924 = vmatprep.subr.msk.bf16.mxu0 %vm660_vm0, %v2455_v15 }
0x120e   : > { %3783 = vmatpush3.bf16.xpose.msra.mxu0 %v2476_v21 }
0x120f   : > { %3925 = vmatprep.subr.msk.bf16.mxu0 %vm660_vm0, %v2456_v22 }
0x1216   : > { %3785 = vmatpush3.bf16.xpose.msra.mxu0 %v2479_v23 }
0x121d   : > { %3787 = vmatmul.mubr.msk.bf16.vlgmr.msra.gmra.mrb[60].mxu0 %vm660_vm0, %v4695_v10 }
0x121e   : > { %3790 = vmatprep.mubr.msk.bf16.mxu0 %vm660_vm0, %v4702_v11 }
0x1225   : > { %3791 = vmatmul.mubr.msk.bf16.gmra.mrb[64].mxu0 %vm660_vm0, %v4709_v13 }
0x1226   : > { %3852 = vmatprep.mubr.msk.bf16.mxu0 %vm808_vm1, %v4716_v14 }
0x12ab   : > { %v2406_v24 = vpop.f32.mrb[56].mxu0 }
0x12ac   : > { %v2412_v3 = vpack.c.bf16 %v2406_v24, %v2406_v24  ;;  %v3768_v26 = vpop.f32.mrb[57].mxu0 }
0x12ad   : > { %v2409_v27 = vpop.f32.mrb[58].mxu0 }
0x12ae   : > { %v2413_v28 = vadd.bf16 %v2412_v3, %v4450_v9  ;;  %v3769_v30 = vpop.f32.mrb[59].mxu0 }
0x12b0   : > { %v2414_v52 = vmax.bf16 %v4090_v2, %v2413_v28 }
0x12b2   : > { %v2415_v53 = vunpack.c.l.bf16 %v2414_v52 }
0x12b4   : > { %v2416_v31 = vmul.f32 %v2415_v53, %v4454_v20 }
0x12b6   : > { %v2417_v32 = vrot.slane %v2416_v31, 4 }
0x12b8   : > { %v2418_v54 = vadd.f32 %v2417_v32, %v2416_v31 }
0x12ba   : > { %v2419_v36 = vrot.slane %v2418_v54, 2 }
0x12bc   : > { %v2420_v55 = vadd.f32 %v2419_v36, %v2418_v54 }
0x12be   : > { %v2421_v25 = vrot.slane %v2420_v55, 1 }
0x12c0   : > { %v2422_v37 = vadd.f32 %v2421_v25, %v2420_v55  ;;  %v3255_v55 = vld [vmem:[%s4225_s26 + $0x380] sm:$0xff]  ;;  %v3256_v25 = vld [vmem:[%s4225_s26 + $0x388] sm:$0xff] }
0x12c2   : > { %v2423_v14 = vadd.f32 %v2422_v37, %v4458_v29 }
0x12c4   : > { %v2424_v38 = vsub.f32 0.0, %v2423_v14  ;;  %v2734_v14 = vpack.c.bf16 %v3256_v25, %v3255_v55 }
0x12c6   : > { %v2425_v39 = vmul.f32 1.442695, %v2424_v38 }
0x12c8   : > { %4006 = vpow2.f32 %v2425_v39  ;;  %v3257_v39 = vld [vmem:[%s4225_s26 + $0x390] sm:$0xff] }
0x12d2   : > { %v4007_v42 = vpop.eup %4006 }
0x12d3   : > { %v2427_v43 = vadd.f32 1.0, %v4007_v42  ;;  %v3258_v42 = vld [vmem:[%s4225_s26 + $0x398] sm:$0xff] }
0x12d5   : > { %4008 = vrcp.f32 %v2427_v43  ;;  %v2743_v43 = vsel %vm660_vm0, %v2734_v14, 0 }
0x12df   : > { %v4009_v44 = vpop.eup %4008 }
0x12e0   : > { %3229 = vst.msk [vmem:[%s4469_s16 + $0x5] sm:$0x1] %vm4465_vm4, %v4009_v44  ;;  %v2735_v44 = vpack.c.bf16 %v3258_v42, %v3257_v39 }
0x12f0   : > { %v3788_v45 = vpop.f32.mrb[60].mxu0 }
0x12f1   : > { %v2515_v46 = vpop.f32.mrb[61].mxu0 }
0x12f2   : > { %v3789_v47 = vpop.f32.mrb[62].mxu0 }
0x12f3   : > { %v2547_v58 = vpack.c.bf16 %v3789_v47, %v3788_v45  ;;  %v2518_v48 = vpop.f32.mrb[63].mxu0  ;;  %v3259_v45 = vld [vmem:[%s4225_s26 + $0x3a0] sm:$0xff]  ;;  %v2746_v47 = vsel %vm660_vm0, %v2735_v44, 0 }
0x12f4   : > { %v2546_v49 = vpack.c.bf16 %v2518_v48, %v2515_v46  ;;  %v3260_v46 = vld [vmem:[%s4225_s26 + $0x3a8] sm:$0xff]  ;;  %v3261_v48 = vld [vmem:[%s4225_s26 + $0x3b0] sm:$0xff] }
0x12f5   : > { %v2551_v1 = vadd.bf16 %v4341_v12, %v2547_v58  ;;  %v2736_v58 = vpack.c.bf16 %v3260_v46, %v3259_v45 }
0x12f6   : > { %v2550_v50 = vadd.bf16 %v4343_v16, %v2546_v49 }
0x12f7   : > { %v2555_v61 = vmax.bf16 %v4090_v2, %v2551_v1  ;;  %v2749_v49 = vsel %vm660_vm0, %v2736_v58, 0 }
0x12f8   : > { %v3792_v51 = vpop.f32.mrb[64].mxu0  ;;  %v2554_v56 = vmax.bf16 %v4090_v2, %v2550_v50  ;;  %v3263_v50 = vld [vmem:[%s4225_s26 + $0x3c0] sm:$0xff] }
0x12f9   : > { %v2531_v57 = vpop.f32.mrb[65].mxu0 }
0x12fa   : > { %v3793_v59 = vpop.f32.mrb[66].mxu0  ;;  %3794 = vmatprep.subr.bf16.mxu1 %v2554_v56 }
0x12fb   : > { %v2549_v4 = vpack.c.bf16 %v3793_v59, %v3792_v51  ;;  %v2534_v5 = vpop.f32.mrb[67].mxu0  ;;  %3795 = vmatpush3.bf16.msra.mxu1 %v2554_v56  ;;  %v3264_v51 = vld [vmem:[%s4225_s26 + $0x3c8] sm:$0xff]  ;;  %v3265_v59 = vld [vmem:[%s4225_s26 + $0x3d0] sm:$0xff] }
0x12fc   : > { %v2548_v6 = vpack.c.bf16 %v2534_v5, %v2531_v57  ;;  %3796 = vmatprep.subr.bf16.mxu1 %v2555_v61  ;;  %v2738_v57 = vpack.c.bf16 %v3264_v51, %v3263_v50 }
0x12fd   : > { %v2553_v8 = vadd.bf16 %v4355_v34, %v2549_v4 }
0x12fe   : > { %v2552_v15 = vadd.bf16 %v4353_v33, %v2548_v6  ;;  %v2755_v4 = vsel %vm660_vm0, %v2738_v57, 0  ;;  %v3267_v6 = vld [vmem:[%s4225_s26 + $0x3e0] sm:$0xff] }
0x12ff   : > { %3797 = vmatpush3.bf16.msra.mxu1 %v2555_v61  ;;  %v2557_v19 = vmax.bf16 %v4090_v2, %v2553_v8  ;;  %v3266_v61 = vld [vmem:[%s4225_s26 + $0x3d8] sm:$0xff]  ;;  %v3268_v8 = vld [vmem:[%s4225_s26 + $0x3e8] sm:$0xff] }
0x1300   : > { %v2556_v18 = vmax.bf16 %v4090_v2, %v2552_v15  ;;  %v2739_v5 = vpack.c.bf16 %v3266_v61, %v3265_v59 }
0x1302   : > { %3798 = vmatprep.subr.bf16.mxu1 %v2556_v18  ;;  %v2758_v15 = vsel %vm660_vm0, %v2739_v5, 0 }
0x1303   : > { %3799 = vmatpush3.bf16.msra.mxu1 %v2556_v18  ;;  %v2740_v18 = vpack.c.bf16 %v3268_v8, %v3267_v6 }
0x1304   : > { %3800 = vmatprep.subr.bf16.mxu1 %v2557_v19 }
0x1307   : > { %3801 = vmatpush3.bf16.msra.mxu1 %v2557_v19  ;;  %v3269_v19 = vld [vmem:[%s4225_s26 + $0x3f0] sm:$0xff] }
0x1308   : > { %3806 = vmatprep.subr.bf16.mxu1 %v4092_v41 }
0x130a   : > { %3803 = vmatmul.mubr.msk.bf16.vlgmr.msra.gmra.mrb[60].mxu1 %vm808_vm1, %v4739_v0 }
0x130b   : > { %3810 = vmatprep.mubr.msk.bf16.mxu1 %vm4093_vm2, %v4092_v41 }
0x13dd   : > { %v3804_v21 = vpop.f32.mrb[60].mxu1 }
0x13de   : > { %v2592_v22 = vpop.f32.mrb[61].mxu1 }
0x13df   : > { %v3805_v23 = vpop.f32.mrb[62].mxu1 }
0x13e0   : > { %v2608_v24 = vpack.c.bf16 %v3805_v23, %v3804_v21  ;;  %v2595_v3 = vpop.f32.mrb[63].mxu1  ;;  %v3270_v21 = vld [vmem:[%s4225_s26 + $0x3f8] sm:$0xff] }
0x13e1   : > { %v2607_v26 = vpack.c.bf16 %v2595_v3, %v2592_v22  ;;  %v2761_v22 = vsel %vm660_vm0, %v2740_v18, 0  ;;  %v2741_v23 = vpack.c.bf16 %v3270_v21, %v3269_v19 }
0x13e2   : > { %v2610_v28 = vadd.bf16 %v4377_v63, %v2608_v24 }
0x13e3   : > { %v2609_v27 = vadd.bf16 %v4375_v60, %v2607_v26  ;;  %v2764_v24 = vsel %vm660_vm0, %v2741_v23, 0 }
0x13e4   : > { %v2612_v52 = vmax.bf16 %v4090_v2, %v2610_v28 }
0x13e5   : > { %v2611_v30 = vmax.bf16 %v4090_v2, %v2609_v27 }
0x13e7   : > { %3807 = vmatpush3.bf16.msra.mxu1 %v2611_v30 }
0x13e8   : > { %3808 = vmatprep.subr.bf16.mxu1 %v4092_v41 }
0x13eb   : > { %3809 = vmatpush3.bf16.msra.mxu1 %v2612_v52 }
0x13ec   : > { %3814 = vmatprep.subr.bf16.mxu1 %v4092_v41 }
0x13ee   : > { %3811 = vmatmul.mubr.msk.bf16.vlgmr.msra.gmra.mrb[64].mxu1 %vm660_vm0, %v4754_v40 }
0x13ef   : > { %3816 = vmatprep.mubr.msk.bf16.mxu1 %vm4093_vm2, %v4092_v41 }
0x14c1   : > { %v2647_v53 = vpop.f32.mrb[64].mxu1 }
0x14c2   : > { %v3812_v31 = vpop.f32.mrb[65].mxu1 }
0x14c3   : > { %v2650_v32 = vpop.f32.mrb[66].mxu1 }
0x14c4   : > { %v2654_v54 = vpack.c.bf16 %v2650_v32, %v2647_v53  ;;  %v3813_v36 = vpop.f32.mrb[67].mxu1 }
0x14c6   : > { %v2655_v37 = vadd.bf16 %v4396_v17, %v2654_v54 }
0x14c8   : > { %v2656_v38 = vmax.bf16 %v4090_v2, %v2655_v37 }
0x14ca   : > { %3815 = vmatpush3.bf16.msra.mxu1 %v2656_v38 }
0x14cb   : > { %3926 = vmatprep.subr.msk.bf16.mxu1 %vm660_vm0, %v2734_v14 }
0x14cd   : > { %3817 = vmatmul.mubr.msk.bf16.vlgmr.msra.gmra.mrb[68].mxu1 %vm940_vm3, %v4768_v7 }
0x14ce   : > { %3836 = vmatprep.mubr.msk.bf16.mxu1 %vm660_vm0, %v4661_v35  ;;  %v3262_v35 = vld [vmem:[%s4225_s26 + $0x3b8] sm:$0xff]  ;;  %s3017_s26 = sshll.u32 %s4469_s16, 4  ;;  %s5006_s26 = int_to_ptr.vmem [resolvable:$true] %s3017_s26 }
0x14cf   : > { %v2737_v1 = vpack.c.bf16 %v3262_v35, %v3261_v48  ;;  %s4026_s25 = scalar_lea.vmem %s5006_s26, 128  ;;  %p4033_p0 = scmp.lt.s32.totalorder %s5006_s26, %s4031_s13 }
0x14d0   : > { %p4027_p11 = scmp.ne.s32.totalorder %s5006_s26, %s4026_s25  ;;  %p4034_p1 = scmp.lt.s32.totalorder %s4032_s30, %s4026_s25 }
0x14d1   : > { %v2752_v56 = vsel %vm660_vm0, %v2737_v1, 0 }
0x14d2   : > { %p4028_p12 = pnand %p4027_p11, %p4193_p5  ;;  %p4035_p2 = por %p4034_p1, %p4033_p0 }
0x14d3   : > { %3821 = vmatpush3.bf16.xpose.msra.mxu1 %v2743_v43 }
0x14d4   : > { %3927 = vmatprep.subr.msk.bf16.mxu1 %vm660_vm0, %v2735_v44  ;;  %p4029_p13 = pneg %p4028_p12 }
0x14d6   : > { %p4036_p3 = pnand %p4035_p2, %p4029_p13 }
0x14db   : > { %3823 = vmatpush3.bf16.xpose.msra.mxu1 %v2746_v47 }
0x14dc   : > { %3928 = vmatprep.subr.msk.bf16.mxu1 %vm660_vm0, %v2736_v58 }
0x14e3   : > { %3825 = vmatpush3.bf16.xpose.msra.mxu1 %v2749_v49 }
0x14e4   : > { %3929 = vmatprep.subr.msk.bf16.mxu1 %vm660_vm0, %v2737_v1 }
0x14eb   : > { %3827 = vmatpush3.bf16.xpose.msra.mxu1 %v2752_v56 }
0x14ec   : > { %3930 = vmatprep.subr.msk.bf16.mxu1 %vm660_vm0, %v2738_v57 }
0x14f3   : > { %3829 = vmatpush3.bf16.xpose.msra.mxu1 %v2755_v4 }
0x14f4   : > { %3931 = vmatprep.subr.msk.bf16.mxu1 %vm660_vm0, %v2739_v5 }
0x14fb   : > { %3831 = vmatpush3.bf16.xpose.msra.mxu1 %v2758_v15 }
0x14fc   : > { %3932 = vmatprep.subr.msk.bf16.mxu1 %vm660_vm0, %v2740_v18 }
0x1503   : > { %3833 = vmatpush3.bf16.xpose.msra.mxu1 %v2761_v22 }
0x1504   : > { %3933 = vmatprep.subr.msk.bf16.mxu1 %vm660_vm0, %v2741_v23 }
0x150b   : > { %3835 = vmatpush3.bf16.xpose.msra.mxu1 %v2764_v24 }
0x1512   : > { %3837 = vmatmul.mubr.msk.bf16.vlgmr.msra.gmra.mrb[72].mxu1 %vm660_vm0, %v4695_v10 }
0x1513   : > { %3840 = vmatprep.mubr.msk.bf16.mxu1 %vm660_vm0, %v4702_v11 }
0x151a   : > { %3841 = vmatmul.mubr.msk.bf16.gmra.mrb[76].mxu1 %vm660_vm0, %v4709_v13 }
0x15a0   : > { %v2691_v3 = vpop.f32.mrb[68].mxu1 }
0x15a1   : > { %v2697_v26 = vpack.c.bf16 %v2691_v3, %v2691_v3  ;;  %v3818_v27 = vpop.f32.mrb[69].mxu1 }
0x15a2   : > { %v2694_v28 = vpop.f32.mrb[70].mxu1 }
0x15a3   : > { %v2698_v30 = vadd.bf16 %v2697_v26, %v4450_v9  ;;  %v3819_v52 = vpop.f32.mrb[71].mxu1 }
0x15a5   : > { %v2699_v53 = vmax.bf16 %v4090_v2, %v2698_v30 }
0x15a7   : > { %v2700_v31 = vunpack.c.l.bf16 %v2699_v53 }
0x15a9   : > { %v2701_v32 = vmul.f32 %v2700_v31, %v4454_v20 }
0x15ab   : > { %v2702_v10 = vrot.slane %v2701_v32, 4 }
0x15ad   : > { %v2703_v54 = vadd.f32 %v2702_v10, %v2701_v32 }
0x15af   : > { %v2704_v36 = vrot.slane %v2703_v54, 2 }
0x15b1   : > { %v2705_v11 = vadd.f32 %v2704_v36, %v2703_v54 }
0x15b3   : > { %v2706_v55 = vrot.slane %v2705_v11, 1 }
0x15b5   : > { %v2707_v25 = vadd.f32 %v2706_v55, %v2705_v11 }
0x15b7   : > { %v2708_v13 = vadd.f32 %v2707_v25, %v4458_v29 }
0x15b9   : > { %v2709_v37 = vsub.f32 0.0, %v2708_v13 }
0x15bb   : > { %v2710_v14 = vmul.f32 1.442695, %v2709_v37 }
0x15bd   : > { %4010 = vpow2.f32 %v2710_v14 }
0x15c7   : > { %v4011_v38 = vpop.eup %4010 }
0x15c8   : > { %v2712_v39 = vadd.f32 1.0, %v4011_v38 }
0x15ca   : > { %4012 = vrcp.f32 %v2712_v39 }
0x15d4   : > { %v4013_v42 = vpop.eup %4012 }
0x15d5   : > { %3254 = vst.msk [vmem:[%s4469_s16 + $0x6] sm:$0x1] %vm4465_vm4, %v4013_v42 }
0x15e5   : > { %v3838_v43 = vpop.f32.mrb[72].mxu1 }
0x15e6   : > { %v2800_v44 = vpop.f32.mrb[73].mxu1 }
0x15e7   : > { %v3839_v45 = vpop.f32.mrb[74].mxu1 }
0x15e8   : > { %v2832_v46 = vpack.c.bf16 %v3839_v45, %v3838_v43  ;;  %v2803_v47 = vpop.f32.mrb[75].mxu1 }
0x15e9   : > { %v2831_v58 = vpack.c.bf16 %v2803_v47, %v2800_v44 }
0x15ea   : > { %v2836_v48 = vadd.bf16 %v4341_v12, %v2832_v46 }
0x15eb   : > { %v2835_v35 = vadd.bf16 %v4343_v16, %v2831_v58 }
0x15ec   : > { %v2840_v56 = vmax.bf16 %v4090_v2, %v2836_v48 }
0x15ed   : > { %v3842_v49 = vpop.f32.mrb[76].mxu1  ;;  %v2839_v1 = vmax.bf16 %v4090_v2, %v2835_v35 }
0x15ee   : > { %v2816_v50 = vpop.f32.mrb[77].mxu1 }
0x15ef   : > { %v3843_v51 = vpop.f32.mrb[78].mxu1  ;;  %3844 = vmatprep.subr.bf16.mxu0 %v2839_v1 }
0x15f0   : > { %v2834_v57 = vpack.c.bf16 %v3843_v51, %v3842_v49  ;;  %v2819_v59 = vpop.f32.mrb[79].mxu1  ;;  %3845 = vmatpush3.bf16.msra.mxu0 %v2839_v1 }
0x15f1   : > { %v2833_v61 = vpack.c.bf16 %v2819_v59, %v2816_v50  ;;  %3846 = vmatprep.subr.bf16.mxu0 %v2840_v56 }
0x15f2   : > { %v2838_v4 = vadd.bf16 %v4355_v34, %v2834_v57 }
0x15f3   : > { %v2837_v5 = vadd.bf16 %v4353_v33, %v2833_v61 }
0x15f4   : > { %3847 = vmatpush3.bf16.msra.mxu0 %v2840_v56  ;;  %v2842_v16 = vmax.bf16 %v4090_v2, %v2838_v4 }
0x15f5   : > { %v2841_v12 = vmax.bf16 %v4090_v2, %v2837_v5 }
0x15f7   : > { %3848 = vmatprep.subr.bf16.mxu0 %v2841_v12 }
0x15f8   : > { %3849 = vmatpush3.bf16.msra.mxu0 %v2841_v12 }
0x15f9   : > { %3850 = vmatprep.subr.bf16.mxu0 %v2842_v16 }
0x15fc   : > { %3851 = vmatpush3.bf16.msra.mxu0 %v2842_v16 }
0x15fd   : > { %3856 = vmatprep.subr.bf16.mxu0 %v4092_v41 }
0x15ff   : > { %3853 = vmatmul.mubr.msk.bf16.vlgmr.msra.gmra.mrb[68].mxu0 %vm808_vm1, %v4739_v0 }
0x1600   : > { %3860 = vmatprep.mubr.msk.bf16.mxu0 %vm4093_vm2, %v4092_v41 }
0x16d2   : > { %v3854_v34 = vpop.f32.mrb[68].mxu0 }
0x16d3   : > { %v2877_v6 = vpop.f32.mrb[69].mxu0 }
0x16d4   : > { %v3855_v33 = vpop.f32.mrb[70].mxu0 }
0x16d5   : > { %v2893_v8 = vpack.c.bf16 %v3855_v33, %v3854_v34  ;;  %v2880_v15 = vpop.f32.mrb[71].mxu0 }
0x16d6   : > { %v2892_v18 = vpack.c.bf16 %v2880_v15, %v2877_v6 }
0x16d7   : > { %v2895_v21 = vadd.bf16 %v4377_v63, %v2893_v8 }
0x16d8   : > { %v2894_v19 = vadd.bf16 %v4375_v60, %v2892_v18 }
0x16d9   : > { %v2897_v0 = vmax.bf16 %v4090_v2, %v2895_v21 }
0x16da   : > { %v2896_v22 = vmax.bf16 %v4090_v2, %v2894_v19 }
0x16dc   : > { %3857 = vmatpush3.bf16.msra.mxu0 %v2896_v22 }
0x16dd   : > { %3858 = vmatprep.subr.bf16.mxu0 %v4092_v41 }
0x16e0   : > { %3859 = vmatpush3.bf16.msra.mxu0 %v2897_v0 }
0x16e1   : > { %3864 = vmatprep.subr.bf16.mxu0 %v4092_v41 }
0x16e3   : > { %3861 = vmatmul.mubr.msk.bf16.vlgmr.msra.gmra.mrb[72].mxu0 %vm660_vm0, %v4754_v40 }
0x16e4   : > { %3866 = vmatprep.mubr.msk.bf16.mxu0 %vm4093_vm2, %v4092_v41 }
0x17b6   : > { %v2932_v23 = vpop.f32.mrb[72].mxu0 }
0x17b7   : > { %v3862_v60 = vpop.f32.mrb[73].mxu0 }
0x17b8   : > { %v2935_v24 = vpop.f32.mrb[74].mxu0 }
0x17b9   : > { %v2939_v63 = vpack.c.bf16 %v2935_v24, %v2932_v23  ;;  %v3863_v3 = vpop.f32.mrb[75].mxu0 }
0x17bb   : > { %v2940_v26 = vadd.bf16 %v4396_v17, %v2939_v63 }
0x17bd   : > { %v2941_v27 = vmax.bf16 %v4090_v2, %v2940_v26 }
0x17bf   : > { %3865 = vmatpush3.bf16.msra.mxu0 %v2941_v27 }
0x17c2   : > { %3867 = vmatmul.mubr.msk.bf16.vlgmr.msra.gmra.mrb[76].mxu0 %vm940_vm3, %v4768_v7 }
0x1895   : > { %v2976_v28 = vpop.f32.mrb[76].mxu0 }
0x1896   : > { %v2982_v30 = vpack.c.bf16 %v2976_v28, %v2976_v28  ;;  %v3868_v52 = vpop.f32.mrb[77].mxu0 }
0x1897   : > { %v2979_v40 = vpop.f32.mrb[78].mxu0 }
0x1898   : > { %v2983_v53 = vadd.bf16 %v2982_v30, %v4450_v9  ;;  %v3869_v41 = vpop.f32.mrb[79].mxu0 }
0x189a   : > { %v2984_v31 = vmax.bf16 %v4090_v2, %v2983_v53 }
0x189c   : > { %v2985_v32 = vunpack.c.l.bf16 %v2984_v31 }
0x189e   : > { %v2986_v17 = vmul.f32 %v2985_v32, %v4454_v20 }
0x18a0   : > { %v2987_v10 = vrot.slane %v2986_v17, 4 }
0x18a2   : > { %v2988_v54 = vadd.f32 %v2987_v10, %v2986_v17 }
0x18a4   : > { %v2989_v36 = vrot.slane %v2988_v54, 2 }
0x18a6   : > { %v2990_v7 = vadd.f32 %v2989_v36, %v2988_v54 }
0x18a8   : > { %v2991_v11 = vrot.slane %v2990_v7, 1 }
0x18aa   : > { %v2992_v55 = vadd.f32 %v2991_v11, %v2990_v7 }
0x18ac   : > { %v2993_v25 = vadd.f32 %v2992_v55, %v4458_v29 }
0x18ae   : > { %v2994_v9 = vsub.f32 0.0, %v2993_v25 }
0x18b0   : > { %v2995_v13 = vmul.f32 1.442695, %v2994_v9 }
0x18b2   : > { %4014 = vpow2.f32 %v2995_v13 }
0x18bc   : > { %v4015_v2 = vpop.eup %4014 }
0x18bd   : > { %v2997_v37 = vadd.f32 1.0, %v4015_v2 }
0x18bf   : > { %4016 = vrcp.f32 %v2997_v37 }
0x18c9   : > { %v4017_v20 = vpop.eup %4016 }
0x18ca   : > { %3279 = vst.msk [vmem:[%s4469_s16 + $0x7] sm:$0x1] %vm4465_vm4, %v4017_v20 }
0x18cb   : > { %4039 = shalt.err (!%p4036_p3)
}
0x18cc   : > { %s4040_s14 = scalar_lea.hbm %s5004_s10, 128  ;;  %s4044_s17 = scalar_lea.hbm %s5062_s11, 256 }
0x18cd   : > { %p4041_p4 = scmp.ne.s32.totalorder %s5004_s10, %s4040_s14  ;;  %p4045_p9 = scmp.lt.u32.totalorder %s5004_s10, %s5062_s11 }
0x18ce   : > { %p4046_p10 = scmp.lt.u32.totalorder %s4044_s17, %s4040_s14  ;;  %p4048_p12 = scmp.lt.u32.totalorder %s4040_s14, %s5004_s10 }
0x18cf   : > { %p4042_p7 = pnand %p4041_p4, %p4193_p5 }
0x18d0   : > { %p4047_p11 = por %p4046_p10, %p4045_p9 }
0x18d1   : > { %p4043_p8 = pneg %p4042_p7 }
0x18d2   : > { %p4049_p13 = por %p4048_p12, %p4047_p11 }
0x18d4   : > { %p4050_p0 = pnand %p4049_p13, %p4043_p8 }
0x18d6   : > { %4053 = shalt.err (!%p4050_p0)
}
0x18d7   : > { %3934 = dma.vmem_to_hbm [thread:$0]  (%p4193_p5), %s5006_s26, 128, %s5004_s10, %s3003_s23  }
0x18d8 PF: > { %p3940_p1 = scmp.ge.s32.totalorder %s4088_s22, 2  ;;  %s3029_s25 = sand.u32 1, %s4076_s19  }
0x18d9   : > { %s3030_s13 = scalar_lea.sflag [#allocation4], %s3029_s25 }
0x18da   : > { %p3937_p2 = pnand %p3940_p1, %p4197_p6 }
0x18dc   : > { %4071 = dma.done.wait (!%p3937_p2), %s3030_s13, 128  }
0x18dd   : > { %4073 = vsyncadd (!%p3937_p2), %s3030_s13, 4294967168  ;;  %p23_p3 = scmp.ge.s32.totalorder %s4181_s24, 4   ;;  %s5067_s19 = smov %s4080_s20 }
0x18de   : > { %s5068_s20 = smov %s4084_s21  ;;  %s5069_s21 = smov %s4191_s27 }
0x18df   : > { %s5070_s22 = smov %s4181_s24  ;;  %25 = sbr.rel (!%p23_p3) target bundleno = 6 (0x6), region = 113 }
0x18e6   :  { %3035 = vsyncpa [#allocation4], 1 }
0x18e7   :  { %3037 = vsyncpa [#allocation4 + $0x1], 1 }

</bundles_post_ra>
